<compile_context>
chip_gen: v7x
topology: tpu7x:2x2x1
jax: 0.10.0
libtpu: 0.0.40
codegen_flags: <defaults>
</compile_context>

<pallas_src>
import functools
import math

import jax
import jax.numpy as jnp
from jax import lax
from jax.experimental import pallas as pl
from jax.experimental.pallas import tpu as pltpu

SMEM = pltpu.MemorySpace.SMEM


# ------------------- single-buffered resident weights (probe) -------------------

@functools.lru_cache(maxsize=None)
def _single_buffer_supported():
    """AOT-compile a tiny kernel with pipeline_mode=pl.Buffered(1).

    Returns True only if the current jax/Mosaic accepts single-buffered
    constant-index-map inputs; otherwise the decoder block falls back to the
    default double-buffered pipeline (still correct, just more VMEM).
    """
    def _probe(x):
        def k(x_ref, o_ref):
            o_ref[...] = x_ref[...] * 2.0
        return pl.pallas_call(
            k,
            grid=(2,),
            in_specs=[pl.BlockSpec((8, 128), lambda i: (0, 0),
                                   pipeline_mode=pl.Buffered(1))],
            out_specs=pl.BlockSpec((8, 128), lambda i: (i, 0)),
            out_shape=jax.ShapeDtypeStruct((16, 128), jnp.float32),
        )(x)
    try:
        jax.jit(_probe).lower(
            jax.ShapeDtypeStruct((8, 128), jnp.float32)).compile()
        return True
    except Exception:
        return False


def _weight_pipeline_mode():
    return pl.Buffered(1) if _single_buffer_supported() else None


# ------------------------- fused decoder-block kernel -------------------------

def _decoder_block_kernel(
    x_ref,        # (T, H)   f32 decoder activations for batch element b
    enc_ref,      # (Te, H)  f32 encoder outputs for batch element b
    enc_vl_ref,   # (1, B)   int32 SMEM encoder valid lengths
    wqkv1_ref,    # (H, 3H)  bf16 fused self-attn Q/K/V projection (bias=False)
    wo1_ref,      # (H, H)   bf16
    g1_ref, b1_ref,          # (1, H) f32 LayerNorm 1
    wq2_ref,      # (H, H)   bf16 cross-attn Q projection
    wkv2_ref,     # (H, 2H)  bf16 fused cross-attn K/V projection
    wo2_ref,      # (H, H)   bf16
    g2_ref, b2_ref,          # (1, H) f32 LayerNorm 2
    wf1_ref, bf1_ref,        # (H, F) bf16, (1, F) f32  FFN dense1
    wf2_ref, bf2_ref,        # (F, H) bf16, (1, H) f32  FFN dense2
    g3_ref, b3_ref,          # (1, H) f32 LayerNorm 3
    out_ref,      # (T, H)   f32 block output
    *attn_refs,   # optional: (nh, T, T) and (nh, T, Te) f32 attention probs
    T, Te, nh, d, H, store_attn,
):
    b_idx = pl.program_id(0)
    bf16 = jnp.bfloat16
    f32 = jnp.float32

    X = x_ref[...]                           # (T, H)  f32
    enc = enc_ref[...]                       # (Te, H) f32
    enc_len = enc_vl_ref[0, b_idx]           # scalar int32

    def mm(a_f32, w_ref):                    # bf16 MXU matmul, f32 accumulation
        return jnp.dot(a_f32.astype(bf16), w_ref[...],
                       preferred_element_type=f32)

    def addnorm(x, y, g, beta):              # LayerNorm(dropout(y) + x), eps=1e-5
        s = x + y
        mu = jnp.mean(s, axis=-1, keepdims=True)
        var = jnp.mean((s - mu) ** 2, axis=-1, keepdims=True)
        return (s - mu) * lax.rsqrt(var + 1e-5) * g + beta

    def split_heads(x2d_bf16, Tk):           # (Tk, H) -> (nh, Tk, d)
        return jnp.concatenate(
            [x2d_bf16[:, h * d:(h + 1) * d].reshape(1, Tk, d)
             for h in range(nh)], axis=0)

    scale = 1.0 / math.sqrt(d)

    def attend(q2d, k2d, v2d, Tk, bias, wo_ref, w_out_ref):
        # Batched across heads: one QK^T einsum, one softmax, one P.V einsum,
        # one W_o matmul (no per-head K=d folds).
        qs = split_heads((q2d * scale).astype(bf16), T)      # (nh, T,  d)
        ks = split_heads(k2d.astype(bf16), Tk)               # (nh, Tk, d)
        vs = split_heads(v2d.astype(bf16), Tk)               # (nh, Tk, d)
        s = jnp.einsum('hqd,hkd->hqk', qs, ks,
                       preferred_element_type=f32)           # (nh, T, Tk) f32
        s = s + bias[None, :, :]                             # additive 0/-1e6 mask
        s = s - jnp.max(s, axis=-1, keepdims=True)
        e = jnp.exp(s)
        p = e * pl.reciprocal(jnp.sum(e, axis=-1, keepdims=True), approx=False)
        if w_out_ref is not None:
            w_out_ref[...] = p                               # one full-block store
        o = jnp.einsum('hqk,hkd->hqd', p.astype(bf16), vs,
                       preferred_element_type=f32)           # (nh, T, d)
        o_cat = jnp.concatenate([o[h] for h in range(nh)], axis=-1)  # (T, H)
        return mm(o_cat, wo_ref)                             # single K=H matmul

    w1_ref = attn_refs[0] if store_attn else None
    w2_ref = attn_refs[1] if store_attn else None

    # ---- self attention (training-mode causal mask; key_values == X) ----
    qkv = mm(X, wqkv1_ref)                                   # (T, 3H)
    qpos = lax.broadcasted_iota(jnp.int32, (T, T), 0)
    kpos = lax.broadcasted_iota(jnp.int32, (T, T), 1)
    causal_bias = jnp.where(kpos <= qpos, f32(0.0), f32(-1e6))
    x2 = attend(qkv[:, :H], qkv[:, H:2 * H], qkv[:, 2 * H:],
                T, causal_bias, wo1_ref, w1_ref)
    y = addnorm(X, x2, g1_ref[...], b1_ref[...])

    # ---- cross attention (encoder valid-length mask) ----
    q2 = mm(y, wq2_ref)                                      # (T, H)
    kv2 = mm(enc, wkv2_ref)                                  # (Te, 2H)
    kpos_e = lax.broadcasted_iota(jnp.int32, (T, Te), 1)
    cross_bias = jnp.where(kpos_e < enc_len, f32(0.0), f32(-1e6))
    y2 = attend(q2, kv2[:, :H], kv2[:, H:], Te, cross_bias, wo2_ref, w2_ref)
    z = addnorm(y, y2, g2_ref[...], b2_ref[...])

    # ---- position-wise FFN ----
    h1 = jnp.maximum(mm(z, wf1_ref) + bf1_ref[...], 0.0)
    f = mm(h1, wf2_ref) + bf2_ref[...]
    out_ref[...] = addnorm(z, f, g3_ref[...], b3_ref[...])


def pallas_decoder_block(x2d, enc2d, enc_valid_lens, blk, *,
                         B, T, Te, num_heads, collect_attn=True):
    H = x2d.shape[-1]
    nh = num_heads
    assert H % nh == 0
    d = H // nh
    F = blk['ffn']['w1'].shape[1]

    kern = functools.partial(_decoder_block_kernel, T=T, Te=Te, nh=nh, d=d, H=H,
                             store_attn=collect_attn)

    wmode = _weight_pipeline_mode()

    def resident(a):
        # full-array block, constant index -> stays resident across grid steps;
        # single-buffered when the Buffered(1) pipeline mode is available.
        nd = a.ndim
        return pl.BlockSpec(a.shape, lambda b: (0,) * nd, pipeline_mode=wmode)

    weights = (blk['attn1']['W_qkv'], blk['attn1']['W_o'],
               blk['ln1']['g'], blk['ln1']['b'],
               blk['attn2']['W_q'], blk['attn2']['W_kv'], blk['attn2']['W_o'],
               blk['ln2']['g'], blk['ln2']['b'],
               blk['ffn']['w1'], blk['ffn']['b1'],
               blk['ffn']['w2'], blk['ffn']['b2'],
               blk['ln3']['g'], blk['ln3']['b'])

    in_specs = [
        pl.BlockSpec((T, H), lambda b: (b, 0)),               # x rows of batch b
        pl.BlockSpec((Te, H), lambda b: (b, 0)),              # enc rows of batch b
        pl.BlockSpec((1, B), lambda b: (0, 0), memory_space=SMEM),
    ] + [resident(w) for w in weights]

    out_shape = [jax.ShapeDtypeStruct((B * T, H), jnp.float32)]
    out_specs = [pl.BlockSpec((T, H), lambda b: (b, 0))]
    if collect_attn:
        out_shape += [jax.ShapeDtypeStruct((B * nh, T, T), jnp.float32),
                      jax.ShapeDtypeStruct((B * nh, T, Te), jnp.float32)]
        out_specs += [pl.BlockSpec((nh, T, T), lambda b: (b, 0, 0)),
                      pl.BlockSpec((nh, T, Te), lambda b: (b, 0, 0))]

    # VMEM budget: resident weights (1 or 2 buffers) + double-buffered
    # activation/output blocks + in-kernel temporaries, with headroom.
    wbuf = 1 if wmode is not None else 2
    weight_bytes = sum(int(w.size) * w.dtype.itemsize for w in weights)
    io_bytes = 2 * 4 * (T * H + Te * H + T * H)
    attn_out_bytes = (2 * 4 * (nh * T * T + nh * T * Te)) if collect_attn else 0
    tmp_bytes = 4 * (3 * T * H + 2 * nh * T * max(T, Te) + T * F + 4 * T * H)
    vmem_limit = int(1.5 * (wbuf * weight_bytes + io_bytes + attn_out_bytes
                            + tmp_bytes)) + (2 << 20)
    vmem_limit = max(min(vmem_limit, 56 << 20), 32 << 20)

    results = pl.pallas_call(
        kern,
        grid=(B,),
        in_specs=in_specs,
        out_specs=tuple(out_specs),
        out_shape=tuple(out_shape),
        compiler_params=pltpu.CompilerParams(
            dimension_semantics=("parallel",),                # v7x: 2 TCs share batch
            vmem_limit_bytes=vmem_limit),
    )(x2d, enc2d, enc_valid_lens.reshape(1, B).astype(jnp.int32), *weights)

    if collect_attn:
        out, w1, w2 = results
    else:
        (out,) = results
        w1 = w2 = None
    return out, w1, w2


# ------------------------- final vocab projection (tiled) -------------------------

def _dense_kernel(x_ref, w_ref, b_ref, o_ref):
    o_ref[...] = (jnp.dot(x_ref[...].astype(jnp.bfloat16), w_ref[...],
                          preferred_element_type=jnp.float32) + b_ref[...])


def _pick_tile(dim, candidates):
    for c in candidates:
        if dim % c == 0:
            return c
    return dim


def pallas_dense(x2d, w, b):
    M, H = x2d.shape
    V = w.shape[1]
    tm = _pick_tile(M, (512, 256, 128))
    tn = _pick_tile(V, (1024, 512, 256, 128))
    return pl.pallas_call(
        _dense_kernel,
        grid=(M // tm, V // tn),
        in_specs=[pl.BlockSpec((tm, H), lambda i, j: (i, 0)),
                  pl.BlockSpec((H, tn), lambda i, j: (0, j)),
                  pl.BlockSpec((1, tn), lambda i, j: (0, j))],
        out_specs=pl.BlockSpec((tm, tn), lambda i, j: (i, j)),
        out_shape=jax.ShapeDtypeStruct((M, V), jnp.float32),
        compiler_params=pltpu.CompilerParams(
            dimension_semantics=("parallel", "parallel")),
    )(x2d, w, b.reshape(1, V))


# ------------------------- model glue -------------------------

def positional_encoding(T, H, max_len=1000):
    pos = jnp.arange(max_len, dtype=jnp.float32)[:, None]
    div = jnp.power(10000.0, jnp.arange(0, H, 2, dtype=jnp.float32) / H)
    angles = pos / div
    P = jnp.zeros((max_len, H), jnp.float32)
    P = P.at[:, 0::2].set(jnp.sin(angles))
    P = P.at[:, 1::2].set(jnp.cos(angles))
    return P[None, :T, :]


def init_params(key, vocab_size, H, ffn_hiddens, num_layers):
    keys = iter(jax.random.split(key, 7 * num_layers + 4))

    def lin(k, fan_in, fan_out):
        # nn.Linear-style init, stored as bf16 (MXU input dtype)
        bound = 1.0 / math.sqrt(fan_in)
        w = jax.random.uniform(k, (fan_in, fan_out), jnp.float32, -bound, bound)
        return w.astype(jnp.bfloat16)

    def ln():
        return {'g': jnp.ones((1, H), jnp.float32),
                'b': jnp.zeros((1, H), jnp.float32)}

    params = {'embedding': jax.random.normal(next(keys), (vocab_size, H),
                                             jnp.float32)}
    blocks = []
    for _ in range(num_layers):
        blocks.append({
            # fused Q/K/V projection (bias=False, as in MultiHeadAttention)
            'attn1': {'W_qkv': lin(next(keys), H, 3 * H),
                      'W_o': lin(next(keys), H, H)},
            'ln1': ln(),
            'attn2': {'W_q': lin(next(keys), H, H),
                      'W_kv': lin(next(keys), H, 2 * H),
                      'W_o': lin(next(keys), H, H)},
            'ln2': ln(),
            'ffn': {'w1': lin(next(keys), H, ffn_hiddens),
                    'b1': jnp.zeros((1, ffn_hiddens), jnp.float32),
                    'w2': lin(next(keys), ffn_hiddens, H),
                    'b2': jnp.zeros((1, H), jnp.float32)},
            'ln3': ln(),
        })
    params['blocks'] = blocks
    params['dense_w'] = lin(next(keys), H, vocab_size)
    params['dense_b'] = jnp.zeros((vocab_size,), jnp.float32)
    return params


@functools.partial(jax.jit,
                   static_argnames=("num_heads", "num_hiddens", "collect_attn"))
def transformer_decoder_forward(params, tokens, enc_outputs, enc_valid_lens,
                                num_heads, num_hiddens, collect_attn=True):
    B, T = tokens.shape
    H = num_hiddens
    Te = enc_outputs.shape[1]

    # glue: embedding lookup * sqrt(H) + positional encoding (dropout = identity)
    X = params['embedding'][tokens] * math.sqrt(H) + positional_encoding(T, H)
    X = X.reshape(B * T, H).astype(jnp.float32)      # lane-dense (rows, hidden)
    enc2d = enc_outputs.reshape(B * Te, H).astype(jnp.float32)

    state_kv = []
    attn_self, attn_cross = [], []
    for blk in params['blocks']:
        # training mode: key_values == X (incremental-decoding cache unused)
        state_kv.append(X.reshape(B, T, H))
        X, w1, w2 = pallas_decoder_block(X, enc2d, enc_valid_lens, blk,
                                         B=B, T=T, Te=Te, num_heads=num_heads,
                                         collect_attn=collect_attn)
        attn_self.append(w1)
        attn_cross.append(w2)

    logits = pallas_dense(X, params['dense_w'],
                          params['dense_b']).reshape(B, T, -1)
    state = [enc_outputs, enc_valid_lens, state_kv]
    return logits, state, [attn_self, attn_cross]


if __name__ == "__main__":
    vocab_size, num_hiddens, num_heads, num_layers, ffn_hiddens = 20, 32, 4, 2, 64
    B, T, T_enc = 2, 8, 8

    # probe Buffered(1) support eagerly (cached), outside any jit trace
    _single_buffer_supported()

    key = jax.random.PRNGKey(0)
    pk, tk, ek = jax.random.split(key, 3)
    params = init_params(pk, vocab_size, num_hiddens, ffn_hiddens, num_layers)
    tokens = jax.random.randint(tk, (B, T), 0, vocab_size, dtype=jnp.int32)
    enc_outputs = jax.random.normal(ek, (B, T_enc, num_hiddens), jnp.float32)
    enc_valid_lens = jnp.array([T_enc, 5], dtype=jnp.int32)

    logits, state, attn_w = transformer_decoder_forward(
        params, tokens, enc_outputs, enc_valid_lens,
        num_heads=num_heads, num_hiddens=num_hiddens)
    jax.block_until_ready(logits)

    assert logits.shape == (B, T, vocab_size)
    assert attn_w[0][0].shape == (B * num_heads, T, T)
    assert attn_w[1][0].shape == (B * num_heads, T, T_enc)
    assert bool(jnp.all(jnp.isfinite(logits)))

    # exact-reciprocal softmax: rows sum to 1 tightly
    row_sums = jnp.sum(attn_w[0][0], axis=-1)
    assert bool(jnp.all(jnp.abs(row_sums - 1.0) < 1e-3))
    # causal mask: strictly-upper-triangular self-attn probs are ~0
    upper = jnp.triu(jnp.ones((T, T), jnp.float32), k=1)[None]
    assert bool(jnp.all(attn_w[0][0] * upper < 1e-6))
    # cross-attn mask: batch 1 has enc_valid_len=5, keys 5.. get ~0 weight
    w2_b1 = attn_w[1][0][num_heads:, :, :]
    assert bool(jnp.all(w2_b1[:, :, 5:] < 1e-6))

    print("KERNEL_OK")
</pallas_src>

<mosaic_0001>
module attributes {stable_mosaic.version = 11 : i64} {
  func.func @_decoder_block_kernel(%arg0: i32, %arg1: memref<8x32xf32, #tpu.memory_space<vmem>>, %arg2: memref<8x32xf32, #tpu.memory_space<vmem>>, %arg3: memref<1x2xi32, #tpu.memory_space<smem>>, %arg4: memref<32x96xbf16, #tpu.memory_space<vmem>>, %arg5: memref<32x32xbf16, #tpu.memory_space<vmem>>, %arg6: memref<1x32xf32, #tpu.memory_space<vmem>>, %arg7: memref<1x32xf32, #tpu.memory_space<vmem>>, %arg8: memref<32x32xbf16, #tpu.memory_space<vmem>>, %arg9: memref<32x64xbf16, #tpu.memory_space<vmem>>, %arg10: memref<32x32xbf16, #tpu.memory_space<vmem>>, %arg11: memref<1x32xf32, #tpu.memory_space<vmem>>, %arg12: memref<1x32xf32, #tpu.memory_space<vmem>>, %arg13: memref<32x64xbf16, #tpu.memory_space<vmem>>, %arg14: memref<1x64xf32, #tpu.memory_space<vmem>>, %arg15: memref<64x32xbf16, #tpu.memory_space<vmem>>, %arg16: memref<1x32xf32, #tpu.memory_space<vmem>>, %arg17: memref<1x32xf32, #tpu.memory_space<vmem>>, %arg18: memref<1x32xf32, #tpu.memory_space<vmem>>, %arg19: memref<8x32xf32, #tpu.memory_space<vmem>>, %arg20: memref<4x8x8xf32, #tpu.memory_space<vmem>>, %arg21: memref<4x8x8xf32, #tpu.memory_space<vmem>>) attributes {dimension_semantics = [#tpu.dimension_semantics<parallel>], iteration_bounds = array<i64: 2>, scalar_prefetch = 0 : i64, scratch_operands = 0 : i64, tpu.core_type = #tpu.core_type<tc>, window_params = [{transform_indices = @transform_0, window_bounds = array<i64: 8, 32>}, {transform_indices = @transform_1, window_bounds = array<i64: 8, 32>}, {transform_indices = @transform_2, window_bounds = array<i64: 1, 2>}, {pipeline_mode = #tpu.pipeline_mode<synchronous>, transform_indices = @transform_3, window_bounds = array<i64: 32, 96>}, {pipeline_mode = #tpu.pipeline_mode<synchronous>, transform_indices = @transform_4, window_bounds = array<i64: 32, 32>}, {pipeline_mode = #tpu.pipeline_mode<synchronous>, transform_indices = @transform_5, window_bounds = array<i64: 1, 32>}, {pipeline_mode = #tpu.pipeline_mode<synchronous>, transform_indices = @transform_6, window_bounds = array<i64: 1, 32>}, {pipeline_mode = #tpu.pipeline_mode<synchronous>, transform_indices = @transform_7, window_bounds = array<i64: 32, 32>}, {pipeline_mode = #tpu.pipeline_mode<synchronous>, transform_indices = @transform_8, window_bounds = array<i64: 32, 64>}, {pipeline_mode = #tpu.pipeline_mode<synchronous>, transform_indices = @transform_9, window_bounds = array<i64: 32, 32>}, {pipeline_mode = #tpu.pipeline_mode<synchronous>, transform_indices = @transform_10, window_bounds = array<i64: 1, 32>}, {pipeline_mode = #tpu.pipeline_mode<synchronous>, transform_indices = @transform_11, window_bounds = array<i64: 1, 32>}, {pipeline_mode = #tpu.pipeline_mode<synchronous>, transform_indices = @transform_12, window_bounds = array<i64: 32, 64>}, {pipeline_mode = #tpu.pipeline_mode<synchronous>, transform_indices = @transform_13, window_bounds = array<i64: 1, 64>}, {pipeline_mode = #tpu.pipeline_mode<synchronous>, transform_indices = @transform_14, window_bounds = array<i64: 64, 32>}, {pipeline_mode = #tpu.pipeline_mode<synchronous>, transform_indices = @transform_15, window_bounds = array<i64: 1, 32>}, {pipeline_mode = #tpu.pipeline_mode<synchronous>, transform_indices = @transform_16, window_bounds = array<i64: 1, 32>}, {pipeline_mode = #tpu.pipeline_mode<synchronous>, transform_indices = @transform_17, window_bounds = array<i64: 1, 32>}, {transform_indices = @transform_18, window_bounds = array<i64: 8, 32>}, {transform_indices = @transform_19, window_bounds = array<i64: 4, 8, 8>}, {transform_indices = @transform_20, window_bounds = array<i64: 4, 8, 8>}]} {
    %c0 = arith.constant 0 : index
    %c0_0 = arith.constant 0 : index
    %0 = vector.load %arg1[%c0, %c0_0] : memref<8x32xf32, #tpu.memory_space<vmem>>, vector<8x32xf32>
    %c0_1 = arith.constant 0 : index
    %c0_2 = arith.constant 0 : index
    %1 = vector.load %arg2[%c0_1, %c0_2] : memref<8x32xf32, #tpu.memory_space<vmem>>, vector<8x32xf32>
    %c0_3 = arith.constant 0 : index
    %2 = arith.index_cast %arg0 : i32 to index
    %3 = memref.load %arg3[%c0_3, %2] : memref<1x2xi32, #tpu.memory_space<smem>>
    %4 = arith.truncf %0 : vector<8x32xf32> to vector<8x32xbf16>
    %c0_4 = arith.constant 0 : index
    %c0_5 = arith.constant 0 : index
    %5 = vector.load %arg4[%c0_4, %c0_5] : memref<32x96xbf16, #tpu.memory_space<vmem>>, vector<32x96xbf16>
    %cst = arith.constant dense<0.000000e+00> : vector<8x96xf32>
    %6 = tpu.matmul %4, %5, %cst {dimension_numbers = #tpu.dot_dimension_numbers<[1], [0], [0], [1], [0, 0, 1, 1], [], []>} : vector<8x32xbf16>, vector<32x96xbf16>, vector<8x96xf32> -> vector<8x96xf32>
    %7 = tpu.iota {dimensions = array<i32: 0>} : vector<8x8xi32>
    %8 = tpu.iota {dimensions = array<i32: 1>} : vector<8x8xi32>
    %9 = arith.cmpi sle, %8, %7 : vector<8x8xi32>
    %cst_6 = arith.constant 0.000000e+00 : f32
    %cst_7 = arith.constant -1.000000e+06 : f32
    %10 = vector.broadcast %cst_6 : f32 to vector<8x8xf32>
    %11 = vector.broadcast %cst_7 : f32 to vector<8x8xf32>
    %12 = arith.select %9, %10, %11 : vector<8x8xi1>, vector<8x8xf32>
    %13 = vector.extract_strided_slice %6 {offsets = [0, 0], sizes = [8, 32], strides = [1, 1]} : vector<8x96xf32> to vector<8x32xf32>
    %14 = vector.extract_strided_slice %6 {offsets = [0, 32], sizes = [8, 32], strides = [1, 1]} : vector<8x96xf32> to vector<8x32xf32>
    %15 = vector.extract_strided_slice %6 {offsets = [0, 64], sizes = [8, 32], strides = [1, 1]} : vector<8x96xf32> to vector<8x32xf32>
    %cst_8 = arith.constant 0.353553385 : f32
    %16 = vector.broadcast %cst_8 : f32 to vector<8x32xf32>
    %17 = arith.mulf %13, %16 : vector<8x32xf32>
    %18 = arith.truncf %17 : vector<8x32xf32> to vector<8x32xbf16>
    %19 = vector.extract_strided_slice %18 {offsets = [0, 0], sizes = [8, 8], strides = [1, 1]} : vector<8x32xbf16> to vector<8x8xbf16>
    %20 = vector.shape_cast %19 : vector<8x8xbf16> to vector<1x8x8xbf16>
    %21 = vector.extract_strided_slice %18 {offsets = [0, 8], sizes = [8, 8], strides = [1, 1]} : vector<8x32xbf16> to vector<8x8xbf16>
    %22 = vector.shape_cast %21 : vector<8x8xbf16> to vector<1x8x8xbf16>
    %23 = vector.extract_strided_slice %18 {offsets = [0, 16], sizes = [8, 8], strides = [1, 1]} : vector<8x32xbf16> to vector<8x8xbf16>
    %24 = vector.shape_cast %23 : vector<8x8xbf16> to vector<1x8x8xbf16>
    %25 = vector.extract_strided_slice %18 {offsets = [0, 24], sizes = [8, 8], strides = [1, 1]} : vector<8x32xbf16> to vector<8x8xbf16>
    %26 = vector.shape_cast %25 : vector<8x8xbf16> to vector<1x8x8xbf16>
    %27 = tpu.concatenate %20, %22, %24, %26 in 0 : vector<1x8x8xbf16>, vector<1x8x8xbf16>, vector<1x8x8xbf16>, vector<1x8x8xbf16> -> vector<4x8x8xbf16>
    %28 = arith.truncf %14 : vector<8x32xf32> to vector<8x32xbf16>
    %29 = vector.extract_strided_slice %28 {offsets = [0, 0], sizes = [8, 8], strides = [1, 1]} : vector<8x32xbf16> to vector<8x8xbf16>
    %30 = vector.shape_cast %29 : vector<8x8xbf16> to vector<1x8x8xbf16>
    %31 = vector.extract_strided_slice %28 {offsets = [0, 8], sizes = [8, 8], strides = [1, 1]} : vector<8x32xbf16> to vector<8x8xbf16>
    %32 = vector.shape_cast %31 : vector<8x8xbf16> to vector<1x8x8xbf16>
    %33 = vector.extract_strided_slice %28 {offsets = [0, 16], sizes = [8, 8], strides = [1, 1]} : vector<8x32xbf16> to vector<8x8xbf16>
    %34 = vector.shape_cast %33 : vector<8x8xbf16> to vector<1x8x8xbf16>
    %35 = vector.extract_strided_slice %28 {offsets = [0, 24], sizes = [8, 8], strides = [1, 1]} : vector<8x32xbf16> to vector<8x8xbf16>
    %36 = vector.shape_cast %35 : vector<8x8xbf16> to vector<1x8x8xbf16>
    %37 = tpu.concatenate %30, %32, %34, %36 in 0 : vector<1x8x8xbf16>, vector<1x8x8xbf16>, vector<1x8x8xbf16>, vector<1x8x8xbf16> -> vector<4x8x8xbf16>
    %38 = arith.truncf %15 : vector<8x32xf32> to vector<8x32xbf16>
    %39 = vector.extract_strided_slice %38 {offsets = [0, 0], sizes = [8, 8], strides = [1, 1]} : vector<8x32xbf16> to vector<8x8xbf16>
    %40 = vector.shape_cast %39 : vector<8x8xbf16> to vector<1x8x8xbf16>
    %41 = vector.extract_strided_slice %38 {offsets = [0, 8], sizes = [8, 8], strides = [1, 1]} : vector<8x32xbf16> to vector<8x8xbf16>
    %42 = vector.shape_cast %41 : vector<8x8xbf16> to vector<1x8x8xbf16>
    %43 = vector.extract_strided_slice %38 {offsets = [0, 16], sizes = [8, 8], strides = [1, 1]} : vector<8x32xbf16> to vector<8x8xbf16>
    %44 = vector.shape_cast %43 : vector<8x8xbf16> to vector<1x8x8xbf16>
    %45 = vector.extract_strided_slice %38 {offsets = [0, 24], sizes = [8, 8], strides = [1, 1]} : vector<8x32xbf16> to vector<8x8xbf16>
    %46 = vector.shape_cast %45 : vector<8x8xbf16> to vector<1x8x8xbf16>
    %47 = tpu.concatenate %40, %42, %44, %46 in 0 : vector<1x8x8xbf16>, vector<1x8x8xbf16>, vector<1x8x8xbf16>, vector<1x8x8xbf16> -> vector<4x8x8xbf16>
    "tpu.trace_start"() <{level = 10 : i32, message = "hqd,hkd->hqk"}> : () -> ()
    %cst_9 = arith.constant dense<0.000000e+00> : vector<4x8x8xf32>
    %48 = tpu.matmul %27, %37, %cst_9 {dimension_numbers = #tpu.dot_dimension_numbers<[2], [2], [1], [1], [0, 0, 0, 1, 1, 1], [0], [0]>} : vector<4x8x8xbf16>, vector<4x8x8xbf16>, vector<4x8x8xf32> -> vector<4x8x8xf32>
    "tpu.trace_stop"() : () -> ()
    %49 = vector.shape_cast %12 : vector<8x8xf32> to vector<1x8x8xf32>
    %50 = vector.broadcast %49 : vector<1x8x8xf32> to vector<4x8x8xf32>
    %51 = arith.addf %48, %50 : vector<4x8x8xf32>
    %cst_10 = arith.constant dense<0xFF800000> : vector<4x8xf32>
    %52 = vector.multi_reduction <maximumf>, %51, %cst_10 [2] : vector<4x8x8xf32> to vector<4x8xf32>
    %53 = vector.shape_cast %52 : vector<4x8xf32> to vector<4x8x1xf32>
    %54 = vector.broadcast %53 : vector<4x8x1xf32> to vector<4x8x8xf32>
    %55 = arith.subf %51, %54 : vector<4x8x8xf32>
    %56 = math.exp %55 : vector<4x8x8xf32>
    %cst_11 = arith.constant dense<0.000000e+00> : vector<4x8xf32>
    %57 = vector.multi_reduction <add>, %56, %cst_11 [2] : vector<4x8x8xf32> to vector<4x8xf32>
    %58 = vector.shape_cast %57 : vector<4x8xf32> to vector<4x8x1xf32>
    %59 = tpu.reciprocal %58 : vector<4x8x1xf32> -> vector<4x8x1xf32>
    %60 = vector.broadcast %59 : vector<4x8x1xf32> to vector<4x8x8xf32>
    %61 = arith.mulf %56, %60 : vector<4x8x8xf32>
    %c0_12 = arith.constant 0 : index
    %c0_13 = arith.constant 0 : index
    %c0_14 = arith.constant 0 : index
    %62 = vector.load %arg20[%c0_12, %c0_13, %c0_14] : memref<4x8x8xf32, #tpu.memory_space<vmem>>, vector<4x8x8xf32>
    tpu.vector_store %arg20[%c0_12, %c0_13, %c0_14], %61 {strides = array<i32>} : memref<4x8x8xf32, #tpu.memory_space<vmem>>, vector<4x8x8xf32>,
    %63 = arith.truncf %61 : vector<4x8x8xf32> to vector<4x8x8xbf16>
    "tpu.trace_start"() <{level = 10 : i32, message = "hqk,hkd->hqd"}> : () -> ()
    %cst_15 = arith.constant dense<0.000000e+00> : vector<4x8x8xf32>
    %64 = tpu.matmul %63, %47, %cst_15 {dimension_numbers = #tpu.dot_dimension_numbers<[2], [1], [1], [2], [0, 0, 0, 1, 1, 2], [0], [0]>} : vector<4x8x8xbf16>, vector<4x8x8xbf16>, vector<4x8x8xf32> -> vector<4x8x8xf32>
    "tpu.trace_stop"() : () -> ()
    %65 = vector.extract_strided_slice %64 {offsets = [0, 0, 0], sizes = [1, 8, 8], strides = [1, 1, 1]} : vector<4x8x8xf32> to vector<1x8x8xf32>
    %66 = vector.shape_cast %65 : vector<1x8x8xf32> to vector<8x8xf32>
    %67 = vector.extract_strided_slice %64 {offsets = [1, 0, 0], sizes = [1, 8, 8], strides = [1, 1, 1]} : vector<4x8x8xf32> to vector<1x8x8xf32>
    %68 = vector.shape_cast %67 : vector<1x8x8xf32> to vector<8x8xf32>
    %69 = vector.extract_strided_slice %64 {offsets = [2, 0, 0], sizes = [1, 8, 8], strides = [1, 1, 1]} : vector<4x8x8xf32> to vector<1x8x8xf32>
    %70 = vector.shape_cast %69 : vector<1x8x8xf32> to vector<8x8xf32>
    %71 = vector.extract_strided_slice %64 {offsets = [3, 0, 0], sizes = [1, 8, 8], strides = [1, 1, 1]} : vector<4x8x8xf32> to vector<1x8x8xf32>
    %72 = vector.shape_cast %71 : vector<1x8x8xf32> to vector<8x8xf32>
    %73 = tpu.concatenate %66, %68, %70, %72 in 1 : vector<8x8xf32>, vector<8x8xf32>, vector<8x8xf32>, vector<8x8xf32> -> vector<8x32xf32>
    %74 = arith.truncf %73 : vector<8x32xf32> to vector<8x32xbf16>
    %c0_16 = arith.constant 0 : index
    %c0_17 = arith.constant 0 : index
    %75 = vector.load %arg5[%c0_16, %c0_17] : memref<32x32xbf16, #tpu.memory_space<vmem>>, vector<32x32xbf16>
    %cst_18 = arith.constant dense<0.000000e+00> : vector<8x32xf32>
    %76 = tpu.matmul %74, %75, %cst_18 {dimension_numbers = #tpu.dot_dimension_numbers<[1], [0], [0], [1], [0, 0, 1, 1], [], []>} : vector<8x32xbf16>, vector<32x32xbf16>, vector<8x32xf32> -> vector<8x32xf32>
    %c0_19 = arith.constant 0 : index
    %c0_20 = arith.constant 0 : index
    %77 = vector.load %arg6[%c0_19, %c0_20] : memref<1x32xf32, #tpu.memory_space<vmem>>, vector<1x32xf32>
    %c0_21 = arith.constant 0 : index
    %c0_22 = arith.constant 0 : index
    %78 = vector.load %arg7[%c0_21, %c0_22] : memref<1x32xf32, #tpu.memory_space<vmem>>, vector<1x32xf32>
    %79 = arith.addf %0, %76 : vector<8x32xf32>
    %cst_23 = arith.constant dense<0.000000e+00> : vector<8xf32>
    %80 = vector.multi_reduction <add>, %79, %cst_23 [1] : vector<8x32xf32> to vector<8xf32>
    %81 = vector.shape_cast %80 : vector<8xf32> to vector<8x1xf32>
    %cst_24 = arith.constant 3.200000e+01 : f32
    %82 = vector.broadcast %cst_24 : f32 to vector<8x1xf32>
    %83 = arith.divf %81, %82 : vector<8x1xf32>
    %84 = vector.broadcast %83 : vector<8x1xf32> to vector<8x32xf32>
    %85 = arith.subf %79, %84 : vector<8x32xf32>
    %86 = arith.mulf %85, %85 : vector<8x32xf32>
    %cst_25 = arith.constant dense<0.000000e+00> : vector<8xf32>
    %87 = vector.multi_reduction <add>, %86, %cst_25 [1] : vector<8x32xf32> to vector<8xf32>
    %88 = vector.shape_cast %87 : vector<8xf32> to vector<8x1xf32>
    %cst_26 = arith.constant 3.200000e+01 : f32
    %89 = vector.broadcast %cst_26 : f32 to vector<8x1xf32>
    %90 = arith.divf %88, %89 : vector<8x1xf32>
    %91 = vector.broadcast %83 : vector<8x1xf32> to vector<8x32xf32>
    %92 = arith.subf %79, %91 : vector<8x32xf32>
    %cst_27 = arith.constant 9.99999974E-6 : f32
    %93 = vector.broadcast %cst_27 : f32 to vector<8x1xf32>
    %94 = arith.addf %90, %93 : vector<8x1xf32>
    %95 = math.rsqrt %94 : vector<8x1xf32>
    %96 = vector.broadcast %95 : vector<8x1xf32> to vector<8x32xf32>
    %97 = arith.mulf %92, %96 : vector<8x32xf32>
    %98 = vector.broadcast %77 : vector<1x32xf32> to vector<8x32xf32>
    %99 = arith.mulf %97, %98 : vector<8x32xf32>
    %100 = vector.broadcast %78 : vector<1x32xf32> to vector<8x32xf32>
    %101 = arith.addf %99, %100 : vector<8x32xf32>
    %102 = arith.truncf %101 : vector<8x32xf32> to vector<8x32xbf16>
    %c0_28 = arith.constant 0 : index
    %c0_29 = arith.constant 0 : index
    %103 = vector.load %arg8[%c0_28, %c0_29] : memref<32x32xbf16, #tpu.memory_space<vmem>>, vector<32x32xbf16>
    %cst_30 = arith.constant dense<0.000000e+00> : vector<8x32xf32>
    %104 = tpu.matmul %102, %103, %cst_30 {dimension_numbers = #tpu.dot_dimension_numbers<[1], [0], [0], [1], [0, 0, 1, 1], [], []>} : vector<8x32xbf16>, vector<32x32xbf16>, vector<8x32xf32> -> vector<8x32xf32>
    %105 = arith.truncf %1 : vector<8x32xf32> to vector<8x32xbf16>
    %c0_31 = arith.constant 0 : index
    %c0_32 = arith.constant 0 : index
    %106 = vector.load %arg9[%c0_31, %c0_32] : memref<32x64xbf16, #tpu.memory_space<vmem>>, vector<32x64xbf16>
    %cst_33 = arith.constant dense<0.000000e+00> : vector<8x64xf32>
    %107 = tpu.matmul %105, %106, %cst_33 {dimension_numbers = #tpu.dot_dimension_numbers<[1], [0], [0], [1], [0, 0, 1, 1], [], []>} : vector<8x32xbf16>, vector<32x64xbf16>, vector<8x64xf32> -> vector<8x64xf32>
    %108 = tpu.iota {dimensions = array<i32: 1>} : vector<8x8xi32>
    %109 = vector.broadcast %3 : i32 to vector<8x8xi32>
    %110 = arith.cmpi slt, %108, %109 : vector<8x8xi32>
    %cst_34 = arith.constant 0.000000e+00 : f32
    %cst_35 = arith.constant -1.000000e+06 : f32
    %111 = vector.broadcast %cst_34 : f32 to vector<8x8xf32>
    %112 = vector.broadcast %cst_35 : f32 to vector<8x8xf32>
    %113 = arith.select %110, %111, %112 : vector<8x8xi1>, vector<8x8xf32>
    %114 = vector.extract_strided_slice %107 {offsets = [0, 0], sizes = [8, 32], strides = [1, 1]} : vector<8x64xf32> to vector<8x32xf32>
    %115 = vector.extract_strided_slice %107 {offsets = [0, 32], sizes = [8, 32], strides = [1, 1]} : vector<8x64xf32> to vector<8x32xf32>
    %cst_36 = arith.constant 0.353553385 : f32
    %116 = vector.broadcast %cst_36 : f32 to vector<8x32xf32>
    %117 = arith.mulf %104, %116 : vector<8x32xf32>
    %118 = arith.truncf %117 : vector<8x32xf32> to vector<8x32xbf16>
    %119 = vector.extract_strided_slice %118 {offsets = [0, 0], sizes = [8, 8], strides = [1, 1]} : vector<8x32xbf16> to vector<8x8xbf16>
    %120 = vector.shape_cast %119 : vector<8x8xbf16> to vector<1x8x8xbf16>
    %121 = vector.extract_strided_slice %118 {offsets = [0, 8], sizes = [8, 8], strides = [1, 1]} : vector<8x32xbf16> to vector<8x8xbf16>
    %122 = vector.shape_cast %121 : vector<8x8xbf16> to vector<1x8x8xbf16>
    %123 = vector.extract_strided_slice %118 {offsets = [0, 16], sizes = [8, 8], strides = [1, 1]} : vector<8x32xbf16> to vector<8x8xbf16>
    %124 = vector.shape_cast %123 : vector<8x8xbf16> to vector<1x8x8xbf16>
    %125 = vector.extract_strided_slice %118 {offsets = [0, 24], sizes = [8, 8], strides = [1, 1]} : vector<8x32xbf16> to vector<8x8xbf16>
    %126 = vector.shape_cast %125 : vector<8x8xbf16> to vector<1x8x8xbf16>
    %127 = tpu.concatenate %120, %122, %124, %126 in 0 : vector<1x8x8xbf16>, vector<1x8x8xbf16>, vector<1x8x8xbf16>, vector<1x8x8xbf16> -> vector<4x8x8xbf16>
    %128 = arith.truncf %114 : vector<8x32xf32> to vector<8x32xbf16>
    %129 = vector.extract_strided_slice %128 {offsets = [0, 0], sizes = [8, 8], strides = [1, 1]} : vector<8x32xbf16> to vector<8x8xbf16>
    %130 = vector.shape_cast %129 : vector<8x8xbf16> to vector<1x8x8xbf16>
    %131 = vector.extract_strided_slice %128 {offsets = [0, 8], sizes = [8, 8], strides = [1, 1]} : vector<8x32xbf16> to vector<8x8xbf16>
    %132 = vector.shape_cast %131 : vector<8x8xbf16> to vector<1x8x8xbf16>
    %133 = vector.extract_strided_slice %128 {offsets = [0, 16], sizes = [8, 8], strides = [1, 1]} : vector<8x32xbf16> to vector<8x8xbf16>
    %134 = vector.shape_cast %133 : vector<8x8xbf16> to vector<1x8x8xbf16>
    %135 = vector.extract_strided_slice %128 {offsets = [0, 24], sizes = [8, 8], strides = [1, 1]} : vector<8x32xbf16> to vector<8x8xbf16>
    %136 = vector.shape_cast %135 : vector<8x8xbf16> to vector<1x8x8xbf16>
    %137 = tpu.concatenate %130, %132, %134, %136 in 0 : vector<1x8x8xbf16>, vector<1x8x8xbf16>, vector<1x8x8xbf16>, vector<1x8x8xbf16> -> vector<4x8x8xbf16>
    %138 = arith.truncf %115 : vector<8x32xf32> to vector<8x32xbf16>
    %139 = vector.extract_strided_slice %138 {offsets = [0, 0], sizes = [8, 8], strides = [1, 1]} : vector<8x32xbf16> to vector<8x8xbf16>
    %140 = vector.shape_cast %139 : vector<8x8xbf16> to vector<1x8x8xbf16>
    %141 = vector.extract_strided_slice %138 {offsets = [0, 8], sizes = [8, 8], strides = [1, 1]} : vector<8x32xbf16> to vector<8x8xbf16>
    %142 = vector.shape_cast %141 : vector<8x8xbf16> to vector<1x8x8xbf16>
    %143 = vector.extract_strided_slice %138 {offsets = [0, 16], sizes = [8, 8], strides = [1, 1]} : vector<8x32xbf16> to vector<8x8xbf16>
    %144 = vector.shape_cast %143 : vector<8x8xbf16> to vector<1x8x8xbf16>
    %145 = vector.extract_strided_slice %138 {offsets = [0, 24], sizes = [8, 8], strides = [1, 1]} : vector<8x32xbf16> to vector<8x8xbf16>
    %146 = vector.shape_cast %145 : vector<8x8xbf16> to vector<1x8x8xbf16>
    %147 = tpu.concatenate %140, %142, %144, %146 in 0 : vector<1x8x8xbf16>, vector<1x8x8xbf16>, vector<1x8x8xbf16>, vector<1x8x8xbf16> -> vector<4x8x8xbf16>
    "tpu.trace_start"() <{level = 10 : i32, message = "hqd,hkd->hqk"}> : () -> ()
    %cst_37 = arith.constant dense<0.000000e+00> : vector<4x8x8xf32>
    %148 = tpu.matmul %127, %137, %cst_37 {dimension_numbers = #tpu.dot_dimension_numbers<[2], [2], [1], [1], [0, 0, 0, 1, 1, 1], [0], [0]>} : vector<4x8x8xbf16>, vector<4x8x8xbf16>, vector<4x8x8xf32> -> vector<4x8x8xf32>
    "tpu.trace_stop"() : () -> ()
    %149 = vector.shape_cast %113 : vector<8x8xf32> to vector<1x8x8xf32>
    %150 = vector.broadcast %149 : vector<1x8x8xf32> to vector<4x8x8xf32>
    %151 = arith.addf %148, %150 : vector<4x8x8xf32>
    %cst_38 = arith.constant dense<0xFF800000> : vector<4x8xf32>
    %152 = vector.multi_reduction <maximumf>, %151, %cst_38 [2] : vector<4x8x8xf32> to vector<4x8xf32>
    %153 = vector.shape_cast %152 : vector<4x8xf32> to vector<4x8x1xf32>
    %154 = vector.broadcast %153 : vector<4x8x1xf32> to vector<4x8x8xf32>
    %155 = arith.subf %151, %154 : vector<4x8x8xf32>
    %156 = math.exp %155 : vector<4x8x8xf32>
    %cst_39 = arith.constant dense<0.000000e+00> : vector<4x8xf32>
    %157 = vector.multi_reduction <add>, %156, %cst_39 [2] : vector<4x8x8xf32> to vector<4x8xf32>
    %158 = vector.shape_cast %157 : vector<4x8xf32> to vector<4x8x1xf32>
    %159 = tpu.reciprocal %158 : vector<4x8x1xf32> -> vector<4x8x1xf32>
    %160 = vector.broadcast %159 : vector<4x8x1xf32> to vector<4x8x8xf32>
    %161 = arith.mulf %156, %160 : vector<4x8x8xf32>
    %c0_40 = arith.constant 0 : index
    %c0_41 = arith.constant 0 : index
    %c0_42 = arith.constant 0 : index
    %162 = vector.load %arg21[%c0_40, %c0_41, %c0_42] : memref<4x8x8xf32, #tpu.memory_space<vmem>>, vector<4x8x8xf32>
    tpu.vector_store %arg21[%c0_40, %c0_41, %c0_42], %161 {strides = array<i32>} : memref<4x8x8xf32, #tpu.memory_space<vmem>>, vector<4x8x8xf32>,
    %163 = arith.truncf %161 : vector<4x8x8xf32> to vector<4x8x8xbf16>
    "tpu.trace_start"() <{level = 10 : i32, message = "hqk,hkd->hqd"}> : () -> ()
    %cst_43 = arith.constant dense<0.000000e+00> : vector<4x8x8xf32>
    %164 = tpu.matmul %163, %147, %cst_43 {dimension_numbers = #tpu.dot_dimension_numbers<[2], [1], [1], [2], [0, 0, 0, 1, 1, 2], [0], [0]>} : vector<4x8x8xbf16>, vector<4x8x8xbf16>, vector<4x8x8xf32> -> vector<4x8x8xf32>
    "tpu.trace_stop"() : () -> ()
    %165 = vector.extract_strided_slice %164 {offsets = [0, 0, 0], sizes = [1, 8, 8], strides = [1, 1, 1]} : vector<4x8x8xf32> to vector<1x8x8xf32>
    %166 = vector.shape_cast %165 : vector<1x8x8xf32> to vector<8x8xf32>
    %167 = vector.extract_strided_slice %164 {offsets = [1, 0, 0], sizes = [1, 8, 8], strides = [1, 1, 1]} : vector<4x8x8xf32> to vector<1x8x8xf32>
    %168 = vector.shape_cast %167 : vector<1x8x8xf32> to vector<8x8xf32>
    %169 = vector.extract_strided_slice %164 {offsets = [2, 0, 0], sizes = [1, 8, 8], strides = [1, 1, 1]} : vector<4x8x8xf32> to vector<1x8x8xf32>
    %170 = vector.shape_cast %169 : vector<1x8x8xf32> to vector<8x8xf32>
    %171 = vector.extract_strided_slice %164 {offsets = [3, 0, 0], sizes = [1, 8, 8], strides = [1, 1, 1]} : vector<4x8x8xf32> to vector<1x8x8xf32>
    %172 = vector.shape_cast %171 : vector<1x8x8xf32> to vector<8x8xf32>
    %173 = tpu.concatenate %166, %168, %170, %172 in 1 : vector<8x8xf32>, vector<8x8xf32>, vector<8x8xf32>, vector<8x8xf32> -> vector<8x32xf32>
    %174 = arith.truncf %173 : vector<8x32xf32> to vector<8x32xbf16>
    %c0_44 = arith.constant 0 : index
    %c0_45 = arith.constant 0 : index
    %175 = vector.load %arg10[%c0_44, %c0_45] : memref<32x32xbf16, #tpu.memory_space<vmem>>, vector<32x32xbf16>
    %cst_46 = arith.constant dense<0.000000e+00> : vector<8x32xf32>
    %176 = tpu.matmul %174, %175, %cst_46 {dimension_numbers = #tpu.dot_dimension_numbers<[1], [0], [0], [1], [0, 0, 1, 1], [], []>} : vector<8x32xbf16>, vector<32x32xbf16>, vector<8x32xf32> -> vector<8x32xf32>
    %c0_47 = arith.constant 0 : index
    %c0_48 = arith.constant 0 : index
    %177 = vector.load %arg11[%c0_47, %c0_48] : memref<1x32xf32, #tpu.memory_space<vmem>>, vector<1x32xf32>
    %c0_49 = arith.constant 0 : index
    %c0_50 = arith.constant 0 : index
    %178 = vector.load %arg12[%c0_49, %c0_50] : memref<1x32xf32, #tpu.memory_space<vmem>>, vector<1x32xf32>
    %179 = arith.addf %101, %176 : vector<8x32xf32>
    %cst_51 = arith.constant dense<0.000000e+00> : vector<8xf32>
    %180 = vector.multi_reduction <add>, %179, %cst_51 [1] : vector<8x32xf32> to vector<8xf32>
    %181 = vector.shape_cast %180 : vector<8xf32> to vector<8x1xf32>
    %cst_52 = arith.constant 3.200000e+01 : f32
    %182 = vector.broadcast %cst_52 : f32 to vector<8x1xf32>
    %183 = arith.divf %181, %182 : vector<8x1xf32>
    %184 = vector.broadcast %183 : vector<8x1xf32> to vector<8x32xf32>
    %185 = arith.subf %179, %184 : vector<8x32xf32>
    %186 = arith.mulf %185, %185 : vector<8x32xf32>
    %cst_53 = arith.constant dense<0.000000e+00> : vector<8xf32>
    %187 = vector.multi_reduction <add>, %186, %cst_53 [1] : vector<8x32xf32> to vector<8xf32>
    %188 = vector.shape_cast %187 : vector<8xf32> to vector<8x1xf32>
    %cst_54 = arith.constant 3.200000e+01 : f32
    %189 = vector.broadcast %cst_54 : f32 to vector<8x1xf32>
    %190 = arith.divf %188, %189 : vector<8x1xf32>
    %191 = vector.broadcast %183 : vector<8x1xf32> to vector<8x32xf32>
    %192 = arith.subf %179, %191 : vector<8x32xf32>
    %cst_55 = arith.constant 9.99999974E-6 : f32
    %193 = vector.broadcast %cst_55 : f32 to vector<8x1xf32>
    %194 = arith.addf %190, %193 : vector<8x1xf32>
    %195 = math.rsqrt %194 : vector<8x1xf32>
    %196 = vector.broadcast %195 : vector<8x1xf32> to vector<8x32xf32>
    %197 = arith.mulf %192, %196 : vector<8x32xf32>
    %198 = vector.broadcast %177 : vector<1x32xf32> to vector<8x32xf32>
    %199 = arith.mulf %197, %198 : vector<8x32xf32>
    %200 = vector.broadcast %178 : vector<1x32xf32> to vector<8x32xf32>
    %201 = arith.addf %199, %200 : vector<8x32xf32>
    %202 = arith.truncf %201 : vector<8x32xf32> to vector<8x32xbf16>
    %c0_56 = arith.constant 0 : index
    %c0_57 = arith.constant 0 : index
    %203 = vector.load %arg13[%c0_56, %c0_57] : memref<32x64xbf16, #tpu.memory_space<vmem>>, vector<32x64xbf16>
    %cst_58 = arith.constant dense<0.000000e+00> : vector<8x64xf32>
    %204 = tpu.matmul %202, %203, %cst_58 {dimension_numbers = #tpu.dot_dimension_numbers<[1], [0], [0], [1], [0, 0, 1, 1], [], []>} : vector<8x32xbf16>, vector<32x64xbf16>, vector<8x64xf32> -> vector<8x64xf32>
    %c0_59 = arith.constant 0 : index
    %c0_60 = arith.constant 0 : index
    %205 = vector.load %arg14[%c0_59, %c0_60] : memref<1x64xf32, #tpu.memory_space<vmem>>, vector<1x64xf32>
    %206 = vector.broadcast %205 : vector<1x64xf32> to vector<8x64xf32>
    %207 = arith.addf %204, %206 : vector<8x64xf32>
    %cst_61 = arith.constant 0.000000e+00 : f32
    %208 = vector.broadcast %cst_61 : f32 to vector<8x64xf32>
    %209 = arith.maximumf %207, %208 : vector<8x64xf32>
    %210 = arith.truncf %209 : vector<8x64xf32> to vector<8x64xbf16>
    %c0_62 = arith.constant 0 : index
    %c0_63 = arith.constant 0 : index
    %211 = vector.load %arg15[%c0_62, %c0_63] : memref<64x32xbf16, #tpu.memory_space<vmem>>, vector<64x32xbf16>
    %cst_64 = arith.constant dense<0.000000e+00> : vector<8x32xf32>
    %212 = tpu.matmul %210, %211, %cst_64 {dimension_numbers = #tpu.dot_dimension_numbers<[1], [0], [0], [1], [0, 0, 1, 1], [], []>} : vector<8x64xbf16>, vector<64x32xbf16>, vector<8x32xf32> -> vector<8x32xf32>
    %c0_65 = arith.constant 0 : index
    %c0_66 = arith.constant 0 : index
    %213 = vector.load %arg16[%c0_65, %c0_66] : memref<1x32xf32, #tpu.memory_space<vmem>>, vector<1x32xf32>
    %214 = vector.broadcast %213 : vector<1x32xf32> to vector<8x32xf32>
    %215 = arith.addf %212, %214 : vector<8x32xf32>
    %c0_67 = arith.constant 0 : index
    %c0_68 = arith.constant 0 : index
    %216 = vector.load %arg17[%c0_67, %c0_68] : memref<1x32xf32, #tpu.memory_space<vmem>>, vector<1x32xf32>
    %c0_69 = arith.constant 0 : index
    %c0_70 = arith.constant 0 : index
    %217 = vector.load %arg18[%c0_69, %c0_70] : memref<1x32xf32, #tpu.memory_space<vmem>>, vector<1x32xf32>
    %218 = arith.addf %201, %215 : vector<8x32xf32>
    %cst_71 = arith.constant dense<0.000000e+00> : vector<8xf32>
    %219 = vector.multi_reduction <add>, %218, %cst_71 [1] : vector<8x32xf32> to vector<8xf32>
    %220 = vector.shape_cast %219 : vector<8xf32> to vector<8x1xf32>
    %cst_72 = arith.constant 3.200000e+01 : f32
    %221 = vector.broadcast %cst_72 : f32 to vector<8x1xf32>
    %222 = arith.divf %220, %221 : vector<8x1xf32>
    %223 = vector.broadcast %222 : vector<8x1xf32> to vector<8x32xf32>
    %224 = arith.subf %218, %223 : vector<8x32xf32>
    %225 = arith.mulf %224, %224 : vector<8x32xf32>
    %cst_73 = arith.constant dense<0.000000e+00> : vector<8xf32>
    %226 = vector.multi_reduction <add>, %225, %cst_73 [1] : vector<8x32xf32> to vector<8xf32>
    %227 = vector.shape_cast %226 : vector<8xf32> to vector<8x1xf32>
    %cst_74 = arith.constant 3.200000e+01 : f32
    %228 = vector.broadcast %cst_74 : f32 to vector<8x1xf32>
    %229 = arith.divf %227, %228 : vector<8x1xf32>
    %230 = vector.broadcast %222 : vector<8x1xf32> to vector<8x32xf32>
    %231 = arith.subf %218, %230 : vector<8x32xf32>
    %cst_75 = arith.constant 9.99999974E-6 : f32
    %232 = vector.broadcast %cst_75 : f32 to vector<8x1xf32>
    %233 = arith.addf %229, %232 : vector<8x1xf32>
    %234 = math.rsqrt %233 : vector<8x1xf32>
    %235 = vector.broadcast %234 : vector<8x1xf32> to vector<8x32xf32>
    %236 = arith.mulf %231, %235 : vector<8x32xf32>
    %237 = vector.broadcast %216 : vector<1x32xf32> to vector<8x32xf32>
    %238 = arith.mulf %236, %237 : vector<8x32xf32>
    %239 = vector.broadcast %217 : vector<1x32xf32> to vector<8x32xf32>
    %240 = arith.addf %238, %239 : vector<8x32xf32>
    %c0_76 = arith.constant 0 : index
    %c0_77 = arith.constant 0 : index
    %241 = vector.load %arg19[%c0_76, %c0_77] : memref<8x32xf32, #tpu.memory_space<vmem>>, vector<8x32xf32>
    tpu.vector_store %arg19[%c0_76, %c0_77], %240 {strides = array<i32>} : memref<8x32xf32, #tpu.memory_space<vmem>>, vector<8x32xf32>,
    return
  }
  func.func @transform_0(%arg0: i32) -> (i32, i32) {
    %c0_i32 = arith.constant 0 : i32
    %c0_i32_0 = arith.constant 0 : i32
    return %arg0, %c0_i32 : i32, i32
  }
  func.func @transform_1(%arg0: i32) -> (i32, i32) {
    %c0_i32 = arith.constant 0 : i32
    %c0_i32_0 = arith.constant 0 : i32
    return %arg0, %c0_i32 : i32, i32
  }
  func.func @transform_2(%arg0: i32) -> (i32, i32) {
    %c0_i32 = arith.constant 0 : i32
    %c0_i32_0 = arith.constant 0 : i32
    %c0_i32_1 = arith.constant 0 : i32
    return %c0_i32, %c0_i32_0 : i32, i32
  }
  func.func @transform_3(%arg0: i32) -> (i32, i32) {
    %c0_i32 = arith.constant 0 : i32
    %c0_i32_0 = arith.constant 0 : i32
    %c0_i32_1 = arith.constant 0 : i32
    return %c0_i32, %c0_i32_0 : i32, i32
  }
  func.func @transform_4(%arg0: i32) -> (i32, i32) {
    %c0_i32 = arith.constant 0 : i32
    %c0_i32_0 = arith.constant 0 : i32
    %c0_i32_1 = arith.constant 0 : i32
    return %c0_i32, %c0_i32_0 : i32, i32
  }
  func.func @transform_5(%arg0: i32) -> (i32, i32) {
    %c0_i32 = arith.constant 0 : i32
    %c0_i32_0 = arith.constant 0 : i32
    %c0_i32_1 = arith.constant 0 : i32
    return %c0_i32, %c0_i32_0 : i32, i32
  }
  func.func @transform_6(%arg0: i32) -> (i32, i32) {
    %c0_i32 = arith.constant 0 : i32
    %c0_i32_0 = arith.constant 0 : i32
    %c0_i32_1 = arith.constant 0 : i32
    return %c0_i32, %c0_i32_0 : i32, i32
  }
  func.func @transform_7(%arg0: i32) -> (i32, i32) {
    %c0_i32 = arith.constant 0 : i32
    %c0_i32_0 = arith.constant 0 : i32
    %c0_i32_1 = arith.constant 0 : i32
    return %c0_i32, %c0_i32_0 : i32, i32
  }
  func.func @transform_8(%arg0: i32) -> (i32, i32) {
    %c0_i32 = arith.constant 0 : i32
    %c0_i32_0 = arith.constant 0 : i32
    %c0_i32_1 = arith.constant 0 : i32
    return %c0_i32, %c0_i32_0 : i32, i32
  }
  func.func @transform_9(%arg0: i32) -> (i32, i32) {
    %c0_i32 = arith.constant 0 : i32
    %c0_i32_0 = arith.constant 0 : i32
    %c0_i32_1 = arith.constant 0 : i32
    return %c0_i32, %c0_i32_0 : i32, i32
  }
  func.func @transform_10(%arg0: i32) -> (i32, i32) {
    %c0_i32 = arith.constant 0 : i32
    %c0_i32_0 = arith.constant 0 : i32
    %c0_i32_1 = arith.constant 0 : i32
    return %c0_i32, %c0_i32_0 : i32, i32
  }
  func.func @transform_11(%arg0: i32) -> (i32, i32) {
    %c0_i32 = arith.constant 0 : i32
    %c0_i32_0 = arith.constant 0 : i32
    %c0_i32_1 = arith.constant 0 : i32
    return %c0_i32, %c0_i32_0 : i32, i32
  }
  func.func @transform_12(%arg0: i32) -> (i32, i32) {
    %c0_i32 = arith.constant 0 : i32
    %c0_i32_0 = arith.constant 0 : i32
    %c0_i32_1 = arith.constant 0 : i32
    return %c0_i32, %c0_i32_0 : i32, i32
  }
  func.func @transform_13(%arg0: i32) -> (i32, i32) {
    %c0_i32 = arith.constant 0 : i32
    %c0_i32_0 = arith.constant 0 : i32
    %c0_i32_1 = arith.constant 0 : i32
    return %c0_i32, %c0_i32_0 : i32, i32
  }
  func.func @transform_14(%arg0: i32) -> (i32, i32) {
    %c0_i32 = arith.constant 0 : i32
    %c0_i32_0 = arith.constant 0 : i32
    %c0_i32_1 = arith.constant 0 : i32
    return %c0_i32, %c0_i32_0 : i32, i32
  }
  func.func @transform_15(%arg0: i32) -> (i32, i32) {
    %c0_i32 = arith.constant 0 : i32
    %c0_i32_0 = arith.constant 0 : i32
    %c0_i32_1 = arith.constant 0 : i32
    return %c0_i32, %c0_i32_0 : i32, i32
  }
  func.func @transform_16(%arg0: i32) -> (i32, i32) {
    %c0_i32 = arith.constant 0 : i32
    %c0_i32_0 = arith.constant 0 : i32
    %c0_i32_1 = arith.constant 0 : i32
    return %c0_i32, %c0_i32_0 : i32, i32
  }
  func.func @transform_17(%arg0: i32) -> (i32, i32) {
    %c0_i32 = arith.constant 0 : i32
    %c0_i32_0 = arith.constant 0 : i32
    %c0_i32_1 = arith.constant 0 : i32
    return %c0_i32, %c0_i32_0 : i32, i32
  }
  func.func @transform_18(%arg0: i32) -> (i32, i32) {
    %c0_i32 = arith.constant 0 : i32
    %c0_i32_0 = arith.constant 0 : i32
    return %arg0, %c0_i32 : i32, i32
  }
  func.func @transform_19(%arg0: i32) -> (i32, i32, i32) {
    %c0_i32 = arith.constant 0 : i32
    %c0_i32_0 = arith.constant 0 : i32
    %c0_i32_1 = arith.constant 0 : i32
    return %arg0, %c0_i32, %c0_i32_0 : i32, i32, i32
  }
  func.func @transform_20(%arg0: i32) -> (i32, i32, i32) {
    %c0_i32 = arith.constant 0 : i32
    %c0_i32_0 = arith.constant 0 : i32
    %c0_i32_1 = arith.constant 0 : i32
    return %arg0, %c0_i32, %c0_i32_0 : i32, i32, i32
  }
}

module attributes {stable_mosaic.version = 11 : i64} {
  func.func @_dense_kernel(%arg0: i32, %arg1: i32, %arg2: memref<16x32xf32, #tpu.memory_space<vmem>>, %arg3: memref<32x20xbf16, #tpu.memory_space<vmem>>, %arg4: memref<1x20xf32, #tpu.memory_space<vmem>>, %arg5: memref<16x20xf32, #tpu.memory_space<vmem>>) attributes {dimension_semantics = [#tpu.dimension_semantics<parallel>, #tpu.dimension_semantics<parallel>], iteration_bounds = array<i64: 1, 1>, scalar_prefetch = 0 : i64, scratch_operands = 0 : i64, tpu.core_type = #tpu.core_type<tc>, window_params = [{transform_indices = @transform_0, window_bounds = array<i64: 16, 32>}, {transform_indices = @transform_1, window_bounds = array<i64: 32, 20>}, {transform_indices = @transform_2, window_bounds = array<i64: 1, 20>}, {transform_indices = @transform_3, window_bounds = array<i64: 16, 20>}]} {
    %c0 = arith.constant 0 : index
    %c0_0 = arith.constant 0 : index
    %0 = vector.load %arg2[%c0, %c0_0] : memref<16x32xf32, #tpu.memory_space<vmem>>, vector<16x32xf32>
    %1 = arith.truncf %0 : vector<16x32xf32> to vector<16x32xbf16>
    %c0_1 = arith.constant 0 : index
    %c0_2 = arith.constant 0 : index
    %2 = vector.load %arg3[%c0_1, %c0_2] : memref<32x20xbf16, #tpu.memory_space<vmem>>, vector<32x20xbf16>
    %cst = arith.constant dense<0.000000e+00> : vector<16x20xf32>
    %3 = tpu.matmul %1, %2, %cst {dimension_numbers = #tpu.dot_dimension_numbers<[1], [0], [0], [1], [0, 0, 1, 1], [], []>} : vector<16x32xbf16>, vector<32x20xbf16>, vector<16x20xf32> -> vector<16x20xf32>
    %c0_3 = arith.constant 0 : index
    %c0_4 = arith.constant 0 : index
    %4 = vector.load %arg4[%c0_3, %c0_4] : memref<1x20xf32, #tpu.memory_space<vmem>>, vector<1x20xf32>
    %5 = vector.broadcast %4 : vector<1x20xf32> to vector<16x20xf32>
    %6 = arith.addf %3, %5 : vector<16x20xf32>
    %c0_5 = arith.constant 0 : index
    %c0_6 = arith.constant 0 : index
    %7 = vector.load %arg5[%c0_5, %c0_6] : memref<16x20xf32, #tpu.memory_space<vmem>>, vector<16x20xf32>
    tpu.vector_store %arg5[%c0_5, %c0_6], %6 {strides = array<i32>} : memref<16x20xf32, #tpu.memory_space<vmem>>, vector<16x20xf32>,
    return
  }
  func.func @transform_0(%arg0: i32, %arg1: i32) -> (i32, i32) {
    %c0_i32 = arith.constant 0 : i32
    %c0_i32_0 = arith.constant 0 : i32
    return %arg0, %c0_i32 : i32, i32
  }
  func.func @transform_1(%arg0: i32, %arg1: i32) -> (i32, i32) {
    %c0_i32 = arith.constant 0 : i32
    %c0_i32_0 = arith.constant 0 : i32
    return %c0_i32, %arg1 : i32, i32
  }
  func.func @transform_2(%arg0: i32, %arg1: i32) -> (i32, i32) {
    %c0_i32 = arith.constant 0 : i32
    %c0_i32_0 = arith.constant 0 : i32
    return %c0_i32, %arg1 : i32, i32
  }
  func.func @transform_3(%arg0: i32, %arg1: i32) -> (i32, i32) {
    %c0_i32 = arith.constant 0 : i32
    return %arg0, %arg1 : i32, i32
  }
}

</mosaic_0001>

<bundles_post_ra>
// kernel: transformer_decoder_forward.5
= control target key start
LH: loop header
LB: loop body
LE: loop exit
PB: predicated region body
PF: predicated region fallthrough
CT: control target
= control target key end

     0   :  { %v152_v1 = vmov 0.0   ;;  %vm153_vm0 = vmmov 0   ;;  %s204_s0 = inlined_call_operand.vmem [shape: f32[16,32], index: 0, kind: input, shape index: {}]   ;;  %s205_s1 = inlined_call_operand.vmem [shape: bf16[32,20], index: 1, kind: input, shape index: {}]   ;;  %s206_s2 = inlined_call_operand.vmem [shape: f32[1,20], index: 2, kind: input, shape index: {}]   ;;  %s207_s3 = inlined_call_operand.hbm [shape: f32[16,20], index: 3, kind: output, shape index: {}]  }
   0x1   :  { %v126_v0 = vld [vmem:[%s205_s1] sm:$0xff]   ;;  %113 = vmatprep.subr.bf16.mxu0 %v152_v1  ;;  %v127_v2 = vld [vmem:[%s205_s1 + $0x8] sm:$0xff]   ;;  %117 = vmatprep.mubr.msk.bf16.mxu0 %vm153_vm0, %v152_v1 }
   0x2   :  { %114 = vmatpush3.bf16.msra.mxu0 %v126_v0  ;;  %v16_v3 = vld [vmem:[%s204_s0] sm:$0xff]  ;;  %v17_v4 = vld [vmem:[%s204_s0 + $0x8] sm:$0xff] }
   0x3   :  { %115 = vmatprep.subr.bf16.mxu0 %v152_v1 }
   0x4   :  { %8 = vsyncpa [#allocation3], 0  ;;  %v18_v5 = vpack.c.bf16 %v17_v4, %v16_v3  ;;  %vm42_vm1 = vcmask 261120   ;;  %v106_v6 = vld [vmem:[%s206_s2] ss:$0 sm:$0xff]  ;;  %s154_s1 = smov [#allocation2]  }
   0x5   :  { %s95_s22 = sshll.u32 %s154_s1, 4  ;;  %vm87_vm2 = vcmask 162816   ;;  %s96_s22 = int_to_ptr.vmem [resolvable:$true] %s95_s22 }
   0x6   :  { %116 = vmatpush3.bf16.msra.mxu0 %v127_v2  ;;  %s128_s0 = scalar_lea.vmem %s96_s22, 256  ;;  %p133_p1 = scmp.lt.s32.totalorder %s96_s22, %s96_s22 }
   0x7   :  { %p129_p0 = scmp.ne.s32.totalorder %s96_s22, %s128_s0  ;;  %p134_p2 = scmp.lt.s32.totalorder %s128_s0, %s128_s0 }
   0x9   :  { %118 = vmatmul.mubr.msk.bf16.vlgmr.msra.gmra.mrb[0].mxu0 %vm42_vm1, %v18_v5  ;;  %p135_p3 = por %p134_p2, %p133_p1 }
   0xb   :  { %p136_p4 = pnand %p135_p3, %p129_p0 }
  0xdc   :  { %v80_v7 = vpop.f32.mrb[0].mxu0 }
  0xdd   :  { %v81_v8 = vadd.f32 %v106_v6, %v80_v7  ;;  %v119_v9 = vpop.f32.mrb[1].mxu0 }
  0xde   :  { %v83_v10 = vpop.f32.mrb[2].mxu0 }
  0xdf   :  { %88 = vst.msk [vmem:[#allocation2] sm:$0xff] %vm87_vm2, %v81_v8  ;;  %v84_v11 = vadd.f32 %v106_v6, %v83_v10  ;;  %v120_v12 = vpop.f32.mrb[3].mxu0 }
  0xe1   :  { %89 = vst.msk [vmem:[#allocation2 + $0x8] sm:$0xff] %vm87_vm2, %v84_v11 }
  0xe2   :  { %139 = shalt.err (!%p136_p4)
}
  0xe3   :  { %s140_s24 = scalar_lea.hbm %s207_s3, 256 }
  0xe4   :  { %p141_p5 = scmp.ne.s32.totalorder %s207_s3, %s140_s24  ;;  %p144_p6 = scmp.lt.u32.totalorder %s140_s24, %s207_s3 }
  0xe6   :  { %p146_p7 = pnand %p144_p6, %p141_p5 }
  0xe8   :  { %149 = shalt.err (!%p146_p7)
}
  0xe9   :  { %s155_s29 = smov 128   ;;  %s156_s30 = smov 8  }
  0xea   :  { %101 = dma.vmem_to_hbm [thread:$0]  %s96_s22, 256, %s207_s3, [#allocation3], %s155_s29, %s155_s29, %s156_s30  }
  0xeb   :  { %150 = dma.done.wait [#allocation3], 256  }
  0xec   :  { %151 = vsyncadd [#allocation3], 4294967040 }
  0xed   :  { %105 = vsyncpa [#allocation3], 1 }

// kernel: transformer_decoder_forward.3
= control target key start
LH: loop header
LB: loop body
LE: loop exit
PB: predicated region body
PF: predicated region fallthrough
CT: control target
= control target key end

     0   :  { %s3497_s0 = inlined_call_operand.vmem [shape: f32[16,32], index: 0, kind: input, shape index: {}]   ;;  %s3498_s1 = inlined_call_operand.vmem [shape: f32[16,32], index: 1, kind: input, shape index: {}]   ;;  %s3499_s2 = inlined_call_operand.vmem [shape: s32[1,2], index: 2, kind: input, shape index: {}]   ;;  %s3500_s3 = inlined_call_operand.vmem [shape: bf16[32,96], index: 3, kind: input, shape index: {}]   ;;  %s3501_s4 = inlined_call_operand.vmem [shape: bf16[32,32], index: 4, kind: input, shape index: {}]   ;;  %s3502_s5 = inlined_call_operand.vmem [shape: f32[1,32], index: 5, kind: input, shape index: {}]   ;;  %s3503_s6 = inlined_call_operand.vmem [shape: f32[1,32], index: 6, kind: input, shape index: {}]   ;;  %s3504_s7 = inlined_call_operand.vmem [shape: bf16[32,32], index: 7, kind: input, shape index: {}]   ;;  %s3505_s8 = inlined_call_operand.vmem [shape: bf16[32,64], index: 8, kind: input, shape index: {}]   ;;  %s3506_s9 = inlined_call_operand.vmem [shape: bf16[32,32], index: 9, kind: input, shape index: {}]   ;;  %s3507_s10 = inlined_call_operand.vmem [shape: f32[1,32], index: 10, kind: input, shape index: {}]   ;;  %s3508_s11 = inlined_call_operand.vmem [shape: f32[1,32], index: 11, kind: input, shape index: {}]   ;;  %s3509_s12 = inlined_call_operand.vmem [shape: bf16[32,64], index: 12, kind: input, shape index: {}]   ;;  %s3510_s13 = inlined_call_operand.vmem [shape: f32[1,64], index: 13, kind: input, shape index: {}]   ;;  %s3511_s14 = inlined_call_operand.vmem [shape: bf16[64,32], index: 14, kind: input, shape index: {}]   ;;  %s3512_s15 = inlined_call_operand.vmem [shape: f32[1,32], index: 15, kind: input, shape index: {}]   ;;  %s3513_s16 = inlined_call_operand.vmem [shape: f32[1,32], index: 16, kind: input, shape index: {}]   ;;  %s3514_s17 = inlined_call_operand.vmem [shape: f32[1,32], index: 17, kind: input, shape index: {}]   ;;  %s3515_s18 = inlined_call_operand.vmem [shape: f32[16,32], index: 18, kind: output, shape index: {0}]   ;;  %s3516_s19 = inlined_call_operand.hbm [shape: f32[8,8,8], index: 19, kind: output, shape index: {1}]   ;;  %s3517_s20 = inlined_call_operand.hbm [shape: f32[8,8,8], index: 20, kind: output, shape index: {2}]  }
   0x1   :  { %3541 = sst [smem:[#allocation16_spill]] %s3497_s0 }
   0x2   :  { %3542 = sst [smem:[#allocation17_spill]] %s3498_s1 }
   0x3   :  { %3543 = sst [smem:[#allocation18_spill]] %s3499_s2 }
   0x4   :  { %3544 = sst [smem:[#allocation19_spill]] %s3500_s3 }
   0x5   :  { %3545 = sst [smem:[#allocation20_spill]] %s3501_s4 }
   0x6   :  { %3546 = sst [smem:[#allocation21_spill]] %s3502_s5 }
   0x7   :  { %3547 = sst [smem:[#allocation22_spill]] %s3503_s6 }
   0x8   :  { %3548 = sst [smem:[#allocation23_spill]] %s3504_s7 }
   0x9   :  { %3549 = sst [smem:[#allocation24_spill]] %s3505_s8 }
   0xa   :  { %3550 = sst [smem:[#allocation25_spill]] %s3506_s9 }
   0xb   :  { %26 = vsyncpa [#allocation4], 0 }
   0xc   :  { %27 = vsyncpa [#allocation3], 0 }
   0xd   :  { %29 = vsyncpa [#allocation3 + $0x1], 0 }
   0xe   :  { %30 = vsyncpa [#allocation7], 0 }
   0xf   :  { %32 = vsyncpa [#allocation7 + $0x1], 0  ;;  %s2988_s1 = smov 0   ;;  %s2990_s22 = smov 0  }
  0x10   :  { %s2992_s23 = smov 0   ;;  %s2994_s24 = smov 0  }
  0x11 LB: > { %3551 = sst [smem:[#allocation11_spill]] %s2858_s22  ;;  %s3009_s2 = sadd.s32 4294967295, %s2866_s24   ;;  %s2866_s24 = sphi %s2994_s24, %s3580_s24   ;;  %s2862_s23 = sphi %s2992_s23, %s3583_s23   ;;  %s2858_s22 = sphi %s2990_s22, %s3582_s22   ;;  %s2854_s1 = sphi %s2988_s1, %s3581_s1  }
  0x12   : > { %3552 = sst [smem:[#allocation12_spill]] %s2862_s23  ;;  %s2353_s25 = sadd.s32 4294967294, %s2866_s24  }
  0x13   : > { %s3013_s3 = sadd.s32 1, %s2866_s24   ;;  %s459_s26 = sadd.s32 1, %s2862_s23 }
  0x14   : > { %3553 = sst [smem:[#allocation13_spill]] %s3013_s3  ;;  %s456_s27 = ssub.s32 %s2866_s24, %s3013_s3 }
  0x15   : > { %p469_p0 = scmp.ne.s32.totalorder %s2862_s23, %s2858_s22  ;;  %p457_p1 = scmp.eq.s32.totalorder %s456_s27, 0 }
  0x16   : > { %p470_p2 = scmp.eq.s32.totalorder %s3009_s2, 1  ;;  %p475_p3 = scmp.ne.s32.totalorder %s2858_s22, %s2854_s1 }
  0x17   : > { %p476_p4 = scmp.eq.s32.totalorder %s2353_s25, 1  ;;  %p2354_p7 = scmp.ge.s32.totalorder %s2866_s24, 1 }
  0x18   : > { %s3024_s28 = scalar_select %p457_p1, %s2862_s23, %s459_s26  }
  0x19   : > { %p3026_p5 = por %p470_p2, %p469_p0  ;;  %p3030_p6 = por %p476_p4, %p475_p3 }
  0x1a   : > { %3554 = sst [smem:[#allocation14_spill]] %s3024_s28  ;;  %p509_p8 = scmp.lt.s32.totalorder %s2866_s24, 3 }
  0x1b   : > { %s3556_s29 = scalar_select %p3030_p6, 1, 0 }
  0x1c   : > { %p2651_p9 = scmp.eq.s32.totalorder %s3009_s2, 0  ;;  %p3037_p10 = pnand %p2354_p7, %p509_p8 }
  0x1d   : > { %3557 = sst [smem:[#allocation15_spill]] %s3556_s29  ;;  %s3559_s25 = sld [smem:[#allocation18_spill]] }
  0x1e   : > { %p2640_p11 = pneg %p3037_p10 }
  0x20   : > { %p2641_p12 = pnand %p2651_p9, %p2640_p11 }
  0x22   : > { %p2755_p0 = pneg %p2641_p12 }
  0x23   : > { %s522_s26 = sshll.u32 %s3559_s25, 4  ;;  %s523_s26 = int_to_ptr.vmem [resolvable:$true] %s522_s26 }
  0x24   : > { %s2753_s27 = scalar_lea.vmem %s523_s26, 16  ;;  %p2761_p3 = scmp.lt.s32.totalorder %s523_s26, %s523_s26 }
  0x25   : > { %p2754_p13 = scmp.ne.s32.totalorder %s523_s26, %s2753_s27  ;;  %p2762_p4 = scmp.lt.s32.totalorder %s2753_s27, %s2753_s27 }
  0x27   : > { %p2756_p1 = pnand %p2755_p0, %p2754_p13  ;;  %p2763_p7 = por %p2762_p4, %p2761_p3 }
  0x29   : > { %p2757_p2 = pneg %p2756_p1 }
  0x2b   : > { %p2764_p8 = pnand %p2763_p7, %p2757_p2 }
  0x2d   : > { %2767 = shalt.err (!%p2764_p8)
}
  0x2e   : > { %s2868_s28 = smov [#allocation2]   ;;  %594 = sbr.rel (%p3037_p10) target bundleno = 4396 (0x112c), region = 92 }
  0x2f   : > { %2643 = dma.vmem_to_smem (!%p2641_p12), %s523_s26, 16, %s2868_s28, [#allocation4]  }
  0x35   : > { %2841 = dma.done.wait (%p2651_p9), [#allocation4], 16  }
  0x36   : > { %2843 = vsyncadd (%p2651_p9), [#allocation4], 4294967280 }
  0x37   : > { %600 = sfence }
  0x38   : > { %s3560_s25 = sld [smem:[#allocation19_spill]]  ;;  %v2869_v1 = vmov 0.0   ;;  %vm2870_vm0 = vmmov 0   ;;  %p665_p9 = scmp.lt.s32.totalorder %s3009_s2, 1  ;;  %vm700_vm1 = vcmask 261120   ;;  %vm769_vm2 = vcmask 64512  }
  0x39   : > { %2476 = vmatprep.subr.bf16.mxu1 %v2869_v1  ;;  %2490 = vmatprep.subr.bf16.mxu0 %v2869_v1  ;;  %s3561_s23 = sld [smem:[#allocation16_spill]]  ;;  %s3523_s30 = smov 104   ;;  %v744_v26 = vlaneseq  ;;  %v2875_v29 = vmov -1000000.0   ;;  %vm1017_vm4 = vcmask 1043456   ;;  %vm1218_vm5 = vcmask 130048  }
  0x3a   : > { %2480 = vmatprep.mubr.msk.bf16.mxu1 %vm2870_vm0, %v2869_v1  ;;  %2492 = vmatprep.mubr.msk.bf16.mxu0 %vm2870_vm0, %v2869_v1  ;;  %s666_s26 = scalar_select %p665_p9, %s3009_s2, 1  ;;  %vm1220_vm6 = vcmask 195584   ;;  %vm2094_vm8 = vcmask 523264  }
  0x3b   : > { %s3526_s0 = smov 112   ;;  %v745_v27 = vshrl.u32 %v744_v26, 7  ;;  %v3128_v28 = vand.u32 127, %v744_v26  ;;  %s2876_s21 = smov 64  }
  0x3c   : > { %s3069_s27 = sshll.u32 %s666_s26, 3  ;;  %s3521_s26 = smov 96  }
  0x3d   : > { %vm748_vm3 = vcmp.le.s32.totalorder %v3128_v28, %v745_v27  ;;  %s3563_s8 = sld [smem:[#allocation24_spill]]  ;;  %s3564_s3 = sld [smem:[#allocation17_spill]] }
  0x3e   : > { %v2699_v0 = vld [vmem:[%s3560_s25] sm:$0xff]   ;;  %v2700_v2 = vld [vmem:[%s3560_s25 + $0x8] sm:$0xff]   ;;  %v749_v30 = vsel %vm748_vm3, 0.0, %v2875_v29  ;;  %s3532_s25 = smov 24   ;;  %s3565_s7 = sld [smem:[#allocation23_spill]] }
  0x3f   : > { %2477 = vmatpush3.bf16.msra.mxu1 %v2699_v0  ;;  %s668_s28 = scalar_lea.vmem %s3561_s23, %s3069_s27  ;;  %s3528_s23 = smov 120  }
  0x40   : > { %2478 = vmatprep.subr.bf16.mxu1 %v2869_v1  ;;  %v3076_v3 = vld [vmem:[%s668_s28] sm:$0xff]  ;;  %s3151_s28 = sand.u32 1, %s2858_s22   ;;  %s3534_s22 = smov 8  }
  0x41   : > { %v683_v4 = vpack.c.bf16 %v3076_v3, %v3076_v3  ;;  %s3566_s5 = sld [smem:[#allocation21_spill]]  ;;  %s3567_s6 = sld [smem:[#allocation22_spill]] }
  0x42   : > { %s3573_s9 = sld [smem:[#allocation25_spill]] }
  0x43   : > { %2479 = vmatpush3.bf16.msra.mxu1 %v2700_v2  ;;  %s672_s29 = scalar_lea.vmem %s3564_s3, %s3069_s27  ;;  %s3571_s3 = smov 96  }
  0x44   : > { %2484 = vmatprep.subr.bf16.mxu1 %v2869_v1 }
  0x46   : > { %2481 = vmatmul.mubr.msk.bf16.vlgmr.msra.gmra.mrb[0].mxu1 %vm700_vm1, %v683_v4 }
  0x47   : > { %2486 = vmatprep.mubr.msk.bf16.mxu1 %vm2870_vm0, %v2869_v1 }
 0x119   : > { %v738_v5 = vpop.f32.mrb[0].mxu1 }
 0x11a   : > { %v3083_v6 = vpack.c.bf16 %v738_v5, %v738_v5  ;;  %v2482_v7 = vpop.f32.mrb[1].mxu1  ;;  %v750_v10 = vmul.f32 0.35355338, %v738_v5 }
 0x11b   : > { %v741_v8 = vpop.f32.mrb[2].mxu1 }
 0x11c   : > { %765 = vrot.lane.b32.xlu1 %v3083_v6, %s3523_s30  ;;  %761 = vrot.lane.b32.xlu0 %v3083_v6, %s3528_s23  ;;  %v2483_v9 = vpop.f32.mrb[3].mxu1  ;;  %v751_v13 = vpack.c.bf16 %v750_v10, %v750_v10 }
 0x120   : > { %767 = vrot.lane.b32.xlu1 %v3083_v6, %s3521_s26  ;;  %763 = vrot.lane.b32.xlu0 %v3083_v6, %s3526_s0 }
 0x18e   : > { %v3093_v11 = vpop.permute.xlu1 %765  ;;  %v3095_v12 = vpop.permute.xlu0 %761 }
 0x18f   : > { %816 = vrot.lane.b32.xlu0 %v3095_v12, %s3521_s26 }
 0x192   : > { %v768_v14 = vpop.permute.xlu1 %767  ;;  %v3099_v15 = vpop.permute.xlu0 %763 }
 0x193   : > { %v774_v16 = vsel %vm769_vm2, %v768_v14, 0  ;;  %864 = vrot.lane.b32.xlu1 %v3099_v15, %s3521_s26  ;;  %753 = vrot.lane.b32.xlu0 %v751_v13, %s3528_s23  ;;  %s3568_s23 = smov 120  }
 0x194   : > { %2485 = vmatpush3.bf16.xpose.msra.mxu1 %v774_v16 }
 0x195   : > { %2496 = vmatprep.subr.bf16.mxu1 %v2869_v1 }
 0x197   : > { %912 = vrot.lane.b32.xlu1 %v3093_v11, %s3521_s26  ;;  %755 = vrot.lane.b32.xlu0 %v751_v13, %s3526_s0  ;;  %s3525_s26 = sshll.u32 %s3151_s28, 5  ;;  %s3562_s0 = sld [smem:[#allocation20_spill]] }
 0x19b   : > { %757 = vrot.lane.b32.xlu1 %v751_v13, %s3523_s30  ;;  %2487 = vmatmul.mubr.msk.bf16.vlgmr.msra.gmra.mrb[4].mxu1 %vm769_vm2, %v751_v13  ;;  %s3156_s30 = scalar_lea.vmem [#allocation5], %s3525_s26  ;;  %s3533_s26 = smov 16  }
 0x19c   : > { %2498 = vmatprep.mubr.msk.bf16.mxu1 %vm2870_vm0, %v2869_v1 }
 0x201   : > { %v817_v17 = vpop.permute.xlu0 %816 }
 0x202   : > { %v822_v18 = vsel %vm769_vm2, %v817_v17, 0 }
 0x203   : > { %2491 = vmatpush3.bf16.xpose.msra.mxu0 %v822_v18 }
 0x204   : > { %2502 = vmatprep.subr.bf16.mxu0 %v2869_v1 }
 0x205   : > { %v865_v19 = vpop.permute.xlu1 %864  ;;  %v754_v21 = vpop.permute.xlu0 %753 }
 0x206   : > { %v870_v20 = vsel %vm769_vm2, %v865_v19, 0 }
 0x207   : > { %2497 = vmatpush3.bf16.xpose.msra.mxu1 %v870_v20 }
 0x208   : > { %2508 = vmatprep.subr.bf16.mxu1 %v2869_v1 }
 0x209   : > { %v913_v22 = vpop.permute.xlu1 %912  ;;  %v756_v24 = vpop.permute.xlu0 %755 }
 0x20a   : > { %v918_v23 = vsel %vm769_vm2, %v913_v22, 0  ;;  %2493 = vmatmul.mubr.msk.bf16.vlgmr.msra.gmra.mrb[0].mxu0 %vm769_vm2, %v754_v21 }
 0x20b   : > { %2503 = vmatpush3.bf16.xpose.msra.mxu0 %v918_v23  ;;  %2504 = vmatprep.mubr.msk.bf16.mxu0 %vm2870_vm0, %v2869_v1 }
 0x20c   : > { %2514 = vmatprep.subr.bf16.mxu0 %v2869_v1 }
 0x20d   : > { %v758_v25 = vpop.permute.xlu1 %757 }
 0x20e   : > { %2499 = vmatmul.mubr.msk.bf16.vlgmr.msra.gmra.mrb[8].mxu1 %vm769_vm2, %v756_v24 }
 0x20f   : > { %2510 = vmatprep.mubr.msk.bf16.mxu1 %vm2870_vm0, %v2869_v1 }
 0x212   : > { %2505 = vmatmul.mubr.msk.bf16.vlgmr.msra.gmra.mrb[4].mxu0 %vm769_vm2, %v758_v25 }
 0x213   : > { %2516 = vmatprep.mubr.msk.bf16.mxu0 %vm2870_vm0, %v2869_v1 }
 0x26e   : > { %v810_v31 = vpop.f32.mrb[4].mxu1 }
 0x26f   : > { %v811_v32 = vadd.f32 %v810_v31, %v749_v30  ;;  %v2488_v33 = vpop.f32.mrb[5].mxu1 }
 0x270   : > { %v813_v34 = vpop.f32.mrb[6].mxu1 }
 0x271   : > { %v2489_v35 = vpop.f32.mrb[7].mxu1  ;;  %v960_v36 = vsel %vm769_vm2, %v811_v32, -inf }
 0x272   : > { %961 = vmax.xlane.f32.xlu0 %v960_v36 }
 0x2dd   : > { %v858_v37 = vpop.f32.mrb[0].mxu0 }
 0x2de   : > { %v859_v38 = vadd.f32 %v858_v37, %v749_v30  ;;  %v2494_v39 = vpop.f32.mrb[1].mxu0 }
 0x2df   : > { %v861_v40 = vpop.f32.mrb[2].mxu0 }
 0x2e0   : > { %v2495_v41 = vpop.f32.mrb[3].mxu0  ;;  %v963_v42 = vsel %vm769_vm2, %v859_v38, -inf }
 0x2e1   : > { %964 = vmax.xlane.f32.xlu1 %v963_v42  ;;  %v906_v43 = vpop.f32.mrb[8].mxu1 }
 0x2e2   : > { %v907_v44 = vadd.f32 %v906_v43, %v749_v30  ;;  %v2500_v45 = vpop.f32.mrb[9].mxu1  ;;  %v2701_v43 = vld [vmem:[%s3562_s0] sm:$0xff]  }
 0x2e3   : > { %v909_v46 = vpop.f32.mrb[10].mxu1 }
 0x2e4   : > { %v2501_v47 = vpop.f32.mrb[11].mxu1  ;;  %v966_v48 = vsel %vm769_vm2, %v907_v44, -inf }
 0x2e5   : > { %v954_v49 = vpop.f32.mrb[4].mxu0  ;;  %967 = vmax.xlane.f32.xlu0 %v966_v48 }
 0x2e6   : > { %v955_v50 = vadd.f32 %v954_v49, %v749_v30  ;;  %v2506_v51 = vpop.f32.mrb[5].mxu0 }
 0x2e7   : > { %v957_v52 = vpop.f32.mrb[6].mxu0 }
 0x2e8   : > { %v2507_v53 = vpop.f32.mrb[7].mxu0  ;;  %v969_v54 = vsel %vm769_vm2, %v955_v50, -inf }
 0x2e9   : > { %970 = vmax.xlane.f32.xlu0 %v969_v54 }
 0x2f2   : > { %1012 = vrot.lane.b32.xlu1 %v3083_v6, %s2876_s21 }
 0x2ff   : > { %v962_v55 = vpop.xlane.xlu0 %961 }
 0x300   : > { %v972_v56 = vsub.f32 %v811_v32, %v962_v55 }
 0x302   : > { %v976_v57 = vmul.f32 1.442695, %v972_v56 }
 0x304   : > { %2715 = vpow2.f32 %v976_v57 }
 0x30e   : > { %v2716_v58 = vpop.eup %2715 }
 0x30f   : > { %v984_v59 = vsel %vm769_vm2, %v2716_v58, 0.0 }
 0x316   : > { %985 = vadd.xlane.f32.xlu1 %v984_v59 }
 0x36e   : > { %v965_v60 = vpop.xlane.xlu1 %964 }
 0x36f   : > { %v973_v61 = vsub.f32 %v859_v38, %v965_v60 }
 0x371   : > { %v978_v62 = vmul.f32 1.442695, %v973_v61 }
 0x372   : > { %v1013_v63 = vpop.permute.xlu1 %1012  ;;  %v968_v0 = vpop.xlane.xlu0 %967 }
 0x373   : > { %2717 = vpow2.f32 %v978_v62  ;;  %v1019_v2 = vsel %vm1017_vm4, %v1013_v63, 0  ;;  %v974_v4 = vsub.f32 %v907_v44, %v968_v0  ;;  %v2702_v44 = vld [vmem:[%s3562_s0 + $0x8] sm:$0xff]  }
 0x374   : > { %2509 = vmatpush3.bf16.msra.mxu1 %v1019_v2 }
 0x375   : > { %v980_v5 = vmul.f32 1.442695, %v974_v4  ;;  %2520 = vmatprep.subr.bf16.mxu1 %v2869_v1 }
 0x376   : > { %v971_v6 = vpop.xlane.xlu0 %970 }
 0x377   : > { %2719 = vpow2.f32 %v980_v5  ;;  %v975_v7 = vsub.f32 %v955_v50, %v971_v6 }
 0x379   : > { %v982_v8 = vmul.f32 1.442695, %v975_v7 }
 0x37b   : > { %2721 = vpow2.f32 %v982_v8 }
 0x37d   : > { %v2718_v9 = vpop.eup %2717 }
 0x37e   : > { %v987_v10 = vsel %vm769_vm2, %v2718_v9, 0.0 }
 0x37f   : > { %988 = vadd.xlane.f32.xlu0 %v987_v10 }
 0x381   : > { %v2720_v13 = vpop.eup %2719 }
 0x382   : > { %v990_v14 = vsel %vm769_vm2, %v2720_v13, 0.0 }
 0x383   : > { %991 = vadd.xlane.f32.xlu1 %v990_v14 }
 0x385   : > { %v2722_v16 = vpop.eup %2721 }
 0x386   : > { %v993_v17 = vsel %vm769_vm2, %v2722_v16, 0.0 }
 0x387   : > { %994 = vadd.xlane.f32.xlu0 %v993_v17  ;;  %v681_v17 = vld [vmem:[%s672_s29] sm:$0xff]  ;;  %s3572_s29 = sshll.u32 %s3151_s28, 5 }
 0x388   : > { %s3306_s0 = scalar_lea.vmem [#allocation6], %s3572_s29  ;;  %s3576_s29 = smov 24  }
 0x394   : > { %1109 = vrot.lane.b32.xlu1 %v3099_v15, %s2876_s21 }
 0x398   : > { %1157 = vrot.lane.b32.xlu1 %v3093_v11, %s2876_s21 }
 0x39d   : > { %1061 = vrot.lane.b32.xlu0 %v3095_v12, %s2876_s21  ;;  %s3569_s21 = smov 112  }
 0x3a3   : > { %v986_v18 = vpop.xlane.xlu1 %985 }
 0x3a4   : > { %2723 = vrcp.f32 %v986_v18  ;;  %v1373_v18 = vpack.c.bf16 %v681_v17, %v681_v17 }
 0x3ae   : > { %v2724_v19 = vpop.eup %2723 }
 0x3af   : > { %v1000_v20 = vmul.f32 %v2724_v19, %v2716_v58  ;;  %v2705_v19 = vld [vmem:[%s3565_s7] sm:$0xff]  }
 0x3b1   : > { %1004 = vst.msk [vmem:[%s3156_s30] sm:$0xff] %vm769_vm2, %v1000_v20  ;;  %v1008_v15 = vpack.c.bf16 %v1000_v20, %v1000_v20  ;;  %v2706_v20 = vld [vmem:[%s3565_s7 + $0x8] sm:$0xff]  }
 0x3b3   : > { %2511 = vmatmul.mubr.msk.bf16.vlgmr.msra.gmra.mrb[12].mxu1 %vm769_vm2, %v1008_v15 }
 0x3b4   : > { %2522 = vmatprep.mubr.msk.bf16.mxu1 %vm2870_vm0, %v2869_v1 }
 0x40c   : > { %v989_v11 = vpop.xlane.xlu0 %988 }
 0x40d   : > { %2725 = vrcp.f32 %v989_v11 }
 0x410   : > { %v992_v12 = vpop.xlane.xlu1 %991 }
 0x411   : > { %2727 = vrcp.f32 %v992_v12 }
 0x414   : > { %v1110_v21 = vpop.permute.xlu1 %1109  ;;  %v995_v22 = vpop.xlane.xlu0 %994 }
 0x415   : > { %v1115_v23 = vsel %vm1017_vm4, %v1110_v21, 0  ;;  %2729 = vrcp.f32 %v995_v22  ;;  %v2378_v22 = vld [vmem:[%s3566_s5] ss:$0 sm:$0xff]  ;;  %s3540_s5 = sshll.u32 %s3009_s2, 9 }
 0x416   : > { %2521 = vmatpush3.bf16.msra.mxu1 %v1115_v23 }
 0x417   : > { %v2726_v24 = vpop.eup %2725  ;;  %2532 = vmatprep.subr.bf16.mxu1 %v2869_v1 }
 0x418   : > { %v1001_v25 = vmul.f32 %v2726_v24, %v2718_v9  ;;  %v1062_v26 = vpop.permute.xlu0 %1061  ;;  %v1158_v30 = vpop.permute.xlu1 %1157  ;;  %v2379_v24 = vld [vmem:[%s3567_s6] ss:$0 sm:$0xff]  ;;  %s2195_s6 = sshll.u32 %s3156_s30, 4  ;;  %s3402_s6 = int_to_ptr.vmem [resolvable:$true] %s2195_s6 }
 0x419   : > { %v1067_v27 = vsel %vm1017_vm4, %v1062_v26, 0  ;;  %v1163_v34 = vsel %vm1017_vm4, %v1158_v30, 0 }
 0x41a   : > { %1005 = vst.msk [vmem:[%s3156_s30 + $0x8] sm:$0xff] %vm769_vm2, %v1001_v25  ;;  %2515 = vmatpush3.bf16.msra.mxu0 %v1067_v27  ;;  %v1009_v31 = vpack.c.bf16 %v1001_v25, %v1001_v25 }
 0x41b   : > { %v2728_v32 = vpop.eup %2727  ;;  %2526 = vmatprep.subr.bf16.mxu0 %v2869_v1 }
 0x41c   : > { %v1002_v33 = vmul.f32 %v2728_v32, %v2720_v13 }
 0x41d   : > { %2517 = vmatmul.mubr.msk.bf16.vlgmr.msra.gmra.mrb[8].mxu0 %vm769_vm2, %v1009_v31 }
 0x41e   : > { %1006 = vst.msk [vmem:[%s3156_s30 + $0x10] sm:$0xff] %vm769_vm2, %v1002_v33  ;;  %2527 = vmatpush3.bf16.msra.mxu0 %v1163_v34  ;;  %v1010_v35 = vpack.c.bf16 %v1002_v33, %v1002_v33  ;;  %2528 = vmatprep.mubr.msk.bf16.mxu0 %vm2870_vm0, %v2869_v1 }
 0x41f   : > { %v2730_v36 = vpop.eup %2729  ;;  %2540 = vmatprep.subr.bf16.mxu0 %v2869_v1 }
 0x420   : > { %v1003_v37 = vmul.f32 %v2730_v36, %v2722_v16  ;;  %2523 = vmatmul.mubr.msk.bf16.vlgmr.msra.gmra.mrb[16].mxu1 %vm769_vm2, %v1010_v35  ;;  %v2703_v16 = vld [vmem:[%s3563_s8] sm:$0xff]  }
 0x421   : > { %2536 = vmatprep.mubr.msk.bf16.mxu1 %vm2870_vm0, %v2869_v1  ;;  %2533 = vmatpush3.bf16.msra.mxu1 %v2701_v43 }
 0x422   : > { %1007 = vst.msk [vmem:[%s3156_s30 + $0x18] sm:$0xff] %vm769_vm2, %v1003_v37  ;;  %v1011_v38 = vpack.c.bf16 %v1003_v37, %v1003_v37  ;;  %2534 = vmatprep.subr.bf16.mxu1 %v2869_v1 }
 0x425   : > { %2529 = vmatmul.mubr.msk.bf16.vlgmr.msra.gmra.mrb[12].mxu0 %vm769_vm2, %v1011_v38  ;;  %2535 = vmatpush3.bf16.msra.mxu1 %v2702_v44 }
 0x426   : > { %2544 = vmatprep.mubr.msk.bf16.mxu0 %vm2870_vm0, %v2869_v1  ;;  %2548 = vmatprep.subr.bf16.mxu1 %v2869_v1 }
 0x427   : > { %2541 = vmatpush3.bf16.msra.mxu0 %v2705_v19 }
 0x428   : > { %2542 = vmatprep.subr.bf16.mxu0 %v2869_v1 }
 0x42b   : > { %2543 = vmatpush3.bf16.msra.mxu0 %v2706_v20 }
 0x42c   : > { %2556 = vmatprep.subr.bf16.mxu0 %v2869_v1 }
 0x486   : > { %v1055_v39 = vpop.f32.mrb[12].mxu1 }
 0x487   : > { %v2512_v40 = vpop.f32.mrb[13].mxu1 }
 0x488   : > { %v1058_v41 = vpop.f32.mrb[14].mxu1 }
 0x489   : > { %v2513_v42 = vpop.f32.mrb[15].mxu1 }
 0x4f0   : > { %v1103_v45 = vpop.f32.mrb[8].mxu0 }
 0x4f1   : > { %1206 = vrot.lane.b32.xlu0 %v1103_v45, %s3534_s22  ;;  %v2518_v46 = vpop.f32.mrb[9].mxu0  ;;  %s682_s22 = sld [smem:[#allocation2 + %s3009_s2]] }
 0x4f2   : > { %v1106_v47 = vpop.f32.mrb[10].mxu0 }
 0x4f3   : > { %v2519_v48 = vpop.f32.mrb[11].mxu0  ;;  %v1151_v49 = vpop.f32.mrb[16].mxu1 }
 0x4f4   : > { %1210 = vrot.lane.b32.xlu1 %v1151_v49, %s3533_s26  ;;  %v2524_v50 = vpop.f32.mrb[17].mxu1  ;;  %s3570_s26 = smov 104  }
 0x4f5   : > { %v1154_v51 = vpop.f32.mrb[18].mxu1 }
 0x4f6   : > { %v2525_v52 = vpop.f32.mrb[19].mxu1 }
 0x4f7   : > { %v1433_v51 = vstv %s682_s22  ;;  %s3574_s22 = smov 8  }
 0x4f8   : > { %v1199_v53 = vpop.f32.mrb[12].mxu0  ;;  %vm1434_vm7 = vcmp.lt.s32.totalorder %v3128_v28, %v1433_v51 }
 0x4f9   : > { %1214 = vrot.lane.b32.xlu0 %v1199_v53, %s3532_s25  ;;  %v2530_v54 = vpop.f32.mrb[13].mxu0  ;;  %v1435_v52 = vsel %vm1434_vm7, 0.0, %v2875_v29  ;;  %s3400_s25 = scalar_lea.hbm %s3516_s19, %s3540_s5 }
 0x4fa   : > { %v1202_v55 = vpop.f32.mrb[14].mxu0 }
 0x4fb   : > { %v2531_v56 = vpop.f32.mrb[15].mxu0 }
 0x563   : > { %v1207_v57 = vpop.permute.xlu0 %1206 }
 0x564   : > { %v1217_v59 = vsel %vm769_vm2, %v1055_v39, %v1207_v57 }
 0x566   : > { %v1211_v58 = vpop.permute.xlu1 %1210 }
 0x567   : > { %v1219_v60 = vsel %vm1218_vm5, %v1217_v59, %v1211_v58 }
 0x56b   : > { %v1215_v61 = vpop.permute.xlu0 %1214 }
 0x56c   : > { %v1221_v62 = vsel %vm1220_vm6, %v1219_v60, %v1215_v61 }
 0x56d   : > { %v1222_v63 = vpack.c.bf16 %v1221_v62, %v1221_v62 }
 0x56f   : > { %2537 = vmatmul.mubr.msk.bf16.vlgmr.msra.gmra.mrb[20].mxu1 %vm700_vm1, %v1222_v63 }
 0x570   : > { %2552 = vmatprep.mubr.msk.bf16.mxu1 %vm2870_vm0, %v2869_v1  ;;  %2549 = vmatpush3.bf16.msra.mxu1 %v2703_v16 }
 0x571   : > { %2550 = vmatprep.subr.bf16.mxu1 %v2869_v1 }
 0x642   : > { %v1276_v0 = vpop.f32.mrb[20].mxu1 }
 0x643   : > { %v1284_v2 = vadd.f32 %v1276_v0, %v3076_v3  ;;  %v2538_v4 = vpop.f32.mrb[21].mxu1  ;;  %v2704_v3 = vld [vmem:[%s3563_s8 + $0x8] sm:$0xff]  }
 0x644   : > { %v1279_v5 = vpop.f32.mrb[22].mxu1  ;;  %2551 = vmatpush3.bf16.msra.mxu1 %v2704_v3 }
 0x645   : > { %v2539_v6 = vpop.f32.mrb[23].mxu1  ;;  %v1285_v7 = vsel %vm700_vm1, %v1284_v2, 0.0  ;;  %2562 = vmatprep.subr.bf16.mxu1 %v2869_v1 }
 0x646   : > { %1286 = vadd.xlane.f32.xlu1 %v1285_v7 }
 0x647   : > { %2553 = vmatmul.mubr.msk.bf16.vlgmr.msra.gmra.mrb[24].mxu1 %vm700_vm1, %v1373_v18 }
 0x648   : > { %2564 = vmatprep.mubr.msk.bf16.mxu1 %vm2870_vm0, %v2869_v1 }
 0x6d3   : > { %v1287_v8 = vpop.xlane.xlu1 %1286 }
 0x6d4   : > { %v1289_v9 = vmul.f32 0.03125, %v1287_v8 }
 0x6d6   : > { %v1290_v10 = vsub.f32 %v1284_v2, %v1289_v9 }
 0x6d8   : > { %v1291_v13 = vmul.f32 %v1290_v10, %v1290_v10 }
 0x6da   : > { %v1292_v14 = vsel %vm700_vm1, %v1291_v13, 0.0 }
 0x6db   : > { %1293 = vadd.xlane.f32.xlu0 %v1292_v14 }
 0x71a   : > { %v1427_v30 = vpop.f32.mrb[24].mxu1 }
 0x71b   : > { %v3240_v31 = vpack.c.bf16 %v1427_v30, %v1427_v30  ;;  %v2554_v32 = vpop.f32.mrb[25].mxu1 }
 0x71c   : > { %v1430_v33 = vpop.f32.mrb[26].mxu1 }
 0x71d   : > { %1447 = vrot.lane.b32.xlu0 %v3240_v31, %s3568_s23  ;;  %v2555_v34 = vpop.f32.mrb[27].mxu1  ;;  %v1457_v35 = vsel %vm769_vm2, %v3240_v31, 0  ;;  %1449 = vrot.lane.b32.xlu1 %v3240_v31, %s3569_s21 }
 0x721   : > { %1451 = vrot.lane.b32.xlu0 %v3240_v31, %s3570_s26 }
 0x768   : > { %v1294_v15 = vpop.xlane.xlu0 %1293 }
 0x769   : > { %v1295_v11 = vmul.f32 0.03125, %v1294_v15 }
 0x76b   : > { %v1296_v12 = vadd.f32 1e-05, %v1295_v11 }
 0x76d   : > { %2731 = vrsqrt.f32 %v1296_v12 }
 0x777   : > { %v2732_v21 = vpop.eup %2731 }
 0x778   : > { %v1298_v23 = vmul.f32 %v2732_v21, %v1290_v10 }
 0x77a   : > { %v1305_v25 = vmul.f32 %v2378_v22, %v1298_v23 }
 0x77c   : > { %v3233_v26 = vadd.f32 %v2379_v24, %v1305_v25 }
 0x77e   : > { %v1313_v27 = vpack.c.bf16 %v3233_v26, %v3233_v26 }
 0x780   : > { %2545 = vmatmul.mubr.msk.bf16.vlgmr.msra.gmra.mrb[16].mxu0 %vm700_vm1, %v1313_v27 }
 0x781   : > { %2558 = vmatprep.mubr.msk.bf16.mxu0 %vm2870_vm0, %v2869_v1  ;;  %2557 = vmatpush3.bf16.xpose.msra.mxu0 %v1457_v35 }
 0x782   : > { %2568 = vmatprep.subr.bf16.mxu0 %v2869_v1 }
 0x78f   : > { %v3251_v36 = vpop.permute.xlu0 %1447  ;;  %v3256_v41 = vpop.permute.xlu1 %1449 }
 0x790   : > { %v1503_v37 = vsel %vm769_vm2, %v3251_v36, 0  ;;  %v1549_v45 = vsel %vm769_vm2, %v3256_v41, 0 }
 0x791   : > { %2563 = vmatpush3.bf16.xpose.msra.mxu1 %v1503_v37 }
 0x792   : > { %2574 = vmatprep.subr.bf16.mxu1 %v2869_v1 }
 0x793   : > { %v3267_v46 = vpop.permute.xlu0 %1451 }
 0x794   : > { %v1595_v48 = vsel %vm769_vm2, %v3267_v46, 0 }
 0x853   : > { %v1367_v38 = vpop.f32.mrb[16].mxu0 }
 0x854   : > { %v1436_v39 = vmul.f32 0.35355338, %v1367_v38  ;;  %v2546_v40 = vpop.f32.mrb[17].mxu0 }
 0x855   : > { %v1370_v42 = vpop.f32.mrb[18].mxu0 }
 0x856   : > { %v1437_v43 = vpack.c.bf16 %v1436_v39, %v1436_v39  ;;  %v2547_v44 = vpop.f32.mrb[19].mxu0 }
 0x858   : > { %1439 = vrot.lane.b32.xlu1 %v1437_v43, %s3568_s23  ;;  %1443 = vrot.lane.b32.xlu0 %v1437_v43, %s3570_s26  ;;  %s2880_s26 = smov [#allocation5]  }
 0x859   : > { %2559 = vmatmul.mubr.msk.bf16.vlgmr.msra.gmra.mrb[20].mxu0 %vm769_vm2, %v1437_v43  ;;  %s2772_s7 = sshll.u32 %s2880_s26, 4  ;;  %s2773_s7 = int_to_ptr.vmem [resolvable:$false] %s2772_s7 }
 0x85a   : > { %2569 = vmatpush3.bf16.xpose.msra.mxu0 %v1549_v45  ;;  %2570 = vmatprep.mubr.msk.bf16.mxu0 %vm2870_vm0, %v2869_v1  ;;  %s2774_s30 = scalar_lea.vmem %s2773_s7, 1024  ;;  %p2775_p13 = scmp.lt.s32.totalorder %s3402_s6, %s2773_s7 }
 0x85b   : > { %2580 = vmatprep.subr.bf16.mxu0 %v2869_v1 }
 0x85c   : > { %1441 = vrot.lane.b32.xlu1 %v1437_v43, %s3569_s21  ;;  %s2768_s21 = scalar_lea.vmem %s3402_s6, 512 }
 0x85d   : > { %p2769_p10 = scmp.ne.s32.totalorder %s3402_s6, %s2768_s21  ;;  %p2776_p0 = scmp.lt.s32.totalorder %s2774_s30, %s2768_s21 }
 0x85f   : > { %p2770_p11 = pnand %p2769_p10, %p3026_p5  ;;  %p2777_p1 = por %p2776_p0, %p2775_p13 }
 0x861   : > { %p2771_p12 = pneg %p2770_p11 }
 0x863   : > { %p2778_p2 = pnand %p2777_p1, %p2771_p12 }
 0x8ca   : > { %v1440_v47 = vpop.permute.xlu1 %1439  ;;  %v1444_v50 = vpop.permute.xlu0 %1443 }
 0x8cb   : > { %2565 = vmatmul.mubr.msk.bf16.vlgmr.msra.gmra.mrb[28].mxu1 %vm769_vm2, %v1440_v47 }
 0x8cc   : > { %2575 = vmatpush3.bf16.xpose.msra.mxu1 %v1595_v48  ;;  %2576 = vmatprep.mubr.msk.bf16.mxu1 %vm2870_vm0, %v2869_v1 }
 0x8cd   : > { %2586 = vmatprep.subr.bf16.mxu1 %v2869_v1 }
 0x8ce   : > { %v1442_v49 = vpop.permute.xlu1 %1441 }
 0x8cf   : > { %2571 = vmatmul.mubr.msk.bf16.vlgmr.msra.gmra.mrb[24].mxu0 %vm769_vm2, %v1442_v49 }
 0x8d0   : > { %2582 = vmatprep.mubr.msk.bf16.mxu0 %vm2870_vm0, %v2869_v1 }
 0x8d3   : > { %2577 = vmatmul.mubr.msk.bf16.vlgmr.msra.gmra.mrb[32].mxu1 %vm769_vm2, %v1444_v50 }
 0x8d4   : > { %2588 = vmatprep.mubr.msk.bf16.mxu1 %vm2870_vm0, %v2869_v1 }
 0x92c   : > { %v1493_v53 = vpop.f32.mrb[20].mxu0 }
 0x92d   : > { %v1494_v54 = vadd.f32 %v1493_v53, %v1435_v52  ;;  %v2560_v55 = vpop.f32.mrb[21].mxu0 }
 0x92e   : > { %v1496_v56 = vpop.f32.mrb[22].mxu0 }
 0x92f   : > { %v2561_v57 = vpop.f32.mrb[23].mxu0  ;;  %v1637_v58 = vsel %vm769_vm2, %v1494_v54, -inf }
 0x930   : > { %1638 = vmax.xlane.f32.xlu1 %v1637_v58 }
 0x99e   : > { %v1539_v59 = vpop.f32.mrb[28].mxu1 }
 0x99f   : > { %v1540_v60 = vadd.f32 %v1539_v59, %v1435_v52  ;;  %v2566_v61 = vpop.f32.mrb[29].mxu1 }
 0x9a0   : > { %v1542_v62 = vpop.f32.mrb[30].mxu1 }
 0x9a1   : > { %v2567_v63 = vpop.f32.mrb[31].mxu1  ;;  %v1640_v0 = vsel %vm769_vm2, %v1540_v60, -inf }
 0x9a2   : > { %v1585_v2 = vpop.f32.mrb[24].mxu0  ;;  %1641 = vmax.xlane.f32.xlu0 %v1640_v0  ;;  %v2707_v63 = vld [vmem:[%s3573_s9] sm:$0xff]   ;;  %v2708_v0 = vld [vmem:[%s3573_s9 + $0x8] sm:$0xff]  }
 0x9a3   : > { %v1586_v28 = vadd.f32 %v1585_v2, %v1435_v52  ;;  %v2572_v4 = vpop.f32.mrb[25].mxu0 }
 0x9a4   : > { %v1588_v29 = vpop.f32.mrb[26].mxu0 }
 0x9a5   : > { %v2573_v5 = vpop.f32.mrb[27].mxu0  ;;  %v1643_v6 = vsel %vm769_vm2, %v1586_v28, -inf }
 0x9a6   : > { %1644 = vmax.xlane.f32.xlu0 %v1643_v6  ;;  %v1631_v7 = vpop.f32.mrb[32].mxu1 }
 0x9a7   : > { %v1632_v8 = vadd.f32 %v1631_v7, %v1435_v52  ;;  %v2578_v9 = vpop.f32.mrb[33].mxu1 }
 0x9a8   : > { %v1634_v10 = vpop.f32.mrb[34].mxu1 }
 0x9a9   : > { %v2579_v13 = vpop.f32.mrb[35].mxu1  ;;  %v1646_v14 = vsel %vm769_vm2, %v1632_v8, -inf }
 0x9aa   : > { %1647 = vmax.xlane.f32.xlu1 %v1646_v14 }
 0x9bb   : > { %1737 = vrot.lane.b32.xlu1 %v3251_v36, %s3571_s3 }
 0x9bc   : > { %1689 = vrot.lane.b32.xlu0 %v3240_v31, %s3571_s3 }
 0x9bd   : > { %v1639_v16 = vpop.xlane.xlu1 %1638 }
 0x9be   : > { %v1649_v3 = vsub.f32 %v1494_v54, %v1639_v16 }
 0x9c0   : > { %v1653_v17 = vmul.f32 1.442695, %v1649_v3 }
 0x9c2   : > { %2733 = vpow2.f32 %v1653_v17 }
 0x9cc   : > { %v2734_v18 = vpop.eup %2733 }
 0x9cd   : > { %v1661_v19 = vsel %vm769_vm2, %v2734_v18, 0.0 }
 0x9db   : > { %1662 = vadd.xlane.f32.xlu0 %v1661_v19 }
 0xa2f   : > { %v1642_v20 = vpop.xlane.xlu0 %1641 }
 0xa30   : > { %v1650_v15 = vsub.f32 %v1540_v60, %v1642_v20 }
 0xa32   : > { %v1655_v11 = vmul.f32 1.442695, %v1650_v15 }
 0xa33   : > { %v1645_v12 = vpop.xlane.xlu0 %1644 }
 0xa34   : > { %2735 = vpow2.f32 %v1655_v11  ;;  %v1651_v21 = vsub.f32 %v1586_v28, %v1645_v12 }
 0xa36   : > { %v1657_v22 = vmul.f32 1.442695, %v1651_v21 }
 0xa37   : > { %v1690_v23 = vpop.permute.xlu0 %1689  ;;  %v1648_v24 = vpop.xlane.xlu1 %1647 }
 0xa38   : > { %2737 = vpow2.f32 %v1657_v22  ;;  %v1695_v25 = vsel %vm1017_vm4, %v1690_v23, 0  ;;  %v1652_v27 = vsub.f32 %v1632_v8, %v1648_v24 }
 0xa39   : > { %2581 = vmatpush3.bf16.msra.mxu0 %v1695_v25 }
 0xa3a   : > { %v1659_v30 = vmul.f32 1.442695, %v1652_v27  ;;  %2592 = vmatprep.subr.bf16.mxu0 %v2869_v1 }
 0xa3b   : > { %v1738_v31 = vpop.permute.xlu1 %1737 }
 0xa3c   : > { %2739 = vpow2.f32 %v1659_v30  ;;  %v1743_v32 = vsel %vm1017_vm4, %v1738_v31, 0 }
 0xa3d   : > { %2587 = vmatpush3.bf16.msra.mxu1 %v1743_v32 }
 0xa3e   : > { %v2736_v33 = vpop.eup %2735  ;;  %2598 = vmatprep.subr.bf16.mxu1 %v2869_v1 }
 0xa3f   : > { %v1664_v34 = vsel %vm769_vm2, %v2736_v33, 0.0 }
 0xa40   : > { %1665 = vadd.xlane.f32.xlu1 %v1664_v34  ;;  %v2711_v34 = vld [vmem:[%s3511_s14] sm:$0xff]  }
 0xa42   : > { %v2738_v35 = vpop.eup %2737 }
 0xa43   : > { %v1667_v36 = vsel %vm769_vm2, %v2738_v35, 0.0 }
 0xa44   : > { %1668 = vadd.xlane.f32.xlu0 %v1667_v36 }
 0xa46   : > { %v2740_v37 = vpop.eup %2739 }
 0xa47   : > { %v1670_v38 = vsel %vm769_vm2, %v2740_v37, 0.0 }
 0xa48   : > { %1671 = vadd.xlane.f32.xlu1 %v1670_v38 }
 0xa59   : > { %1785 = vrot.lane.b32.xlu1 %v3256_v41, %s3571_s3 }
 0xa5a   : > { %1833 = vrot.lane.b32.xlu0 %v3267_v46, %s3571_s3  ;;  %s3575_s3 = smov 16  }
 0xa68   : > { %v1663_v39 = vpop.xlane.xlu0 %1662 }
 0xa69   : > { %2741 = vrcp.f32 %v1663_v39 }
 0xa73   : > { %v2742_v40 = vpop.eup %2741 }
 0xa74   : > { %v1677_v42 = vmul.f32 %v2742_v40, %v2734_v18  ;;  %v2397_v40 = vld [vmem:[%s3507_s10] ss:$0 sm:$0xff] }
 0xa76   : > { %1681 = vst.msk [vmem:[%s3306_s0] sm:$0xff] %vm769_vm2, %v1677_v42  ;;  %v1685_v43 = vpack.c.bf16 %v1677_v42, %v1677_v42 }
 0xa78   : > { %2583 = vmatmul.mubr.msk.bf16.vlgmr.msra.gmra.mrb[28].mxu0 %vm769_vm2, %v1685_v43  ;;  %v2398_v43 = vld [vmem:[%s3508_s11] ss:$0 sm:$0xff] }
 0xa79   : > { %2594 = vmatprep.mubr.msk.bf16.mxu0 %vm2870_vm0, %v2869_v1 }
 0xacd   : > { %v1666_v41 = vpop.xlane.xlu1 %1665 }
 0xace   : > { %2743 = vrcp.f32 %v1666_v41 }
 0xad1   : > { %v1669_v44 = vpop.xlane.xlu0 %1668 }
 0xad2   : > { %2745 = vrcp.f32 %v1669_v44 }
 0xad5   : > { %v1672_v45 = vpop.xlane.xlu1 %1671  ;;  %v1834_v49 = vpop.permute.xlu0 %1833 }
 0xad6   : > { %2747 = vrcp.f32 %v1672_v45  ;;  %v1839_v54 = vsel %vm1017_vm4, %v1834_v49, 0 }
 0xad8   : > { %v2744_v46 = vpop.eup %2743 }
 0xad9   : > { %v1678_v47 = vmul.f32 %v2744_v46, %v2736_v33  ;;  %v1786_v48 = vpop.permute.xlu1 %1785  ;;  %v2709_v33 = vld [vmem:[%s3509_s12] sm:$0xff]   ;;  %v2713_v46 = vld [vmem:[%s3511_s14 + $0x10] sm:$0xff]  }
 0xada   : > { %v1791_v50 = vsel %vm1017_vm4, %v1786_v48, 0  ;;  %v2399_v48 = vld [vmem:[%s3510_s13] ss:$0 sm:$0xff] }
 0xadb   : > { %1682 = vst.msk [vmem:[%s3306_s0 + $0x8] sm:$0xff] %vm769_vm2, %v1678_v47  ;;  %2593 = vmatpush3.bf16.msra.mxu0 %v1791_v50  ;;  %v1686_v51 = vpack.c.bf16 %v1678_v47, %v1678_v47  ;;  %v2714_v47 = vld [vmem:[%s3511_s14 + $0x18] sm:$0xff]  }
 0xadc   : > { %v2746_v52 = vpop.eup %2745  ;;  %2604 = vmatprep.subr.bf16.mxu0 %v2869_v1 }
 0xadd   : > { %v1679_v53 = vmul.f32 %v2746_v52, %v2738_v35  ;;  %2589 = vmatmul.mubr.msk.bf16.vlgmr.msra.gmra.mrb[36].mxu1 %vm769_vm2, %v1686_v51  ;;  %v2712_v35 = vld [vmem:[%s3511_s14 + $0x8] sm:$0xff]  }
 0xade   : > { %2599 = vmatpush3.bf16.msra.mxu1 %v1839_v54  ;;  %2600 = vmatprep.mubr.msk.bf16.mxu1 %vm2870_vm0, %v2869_v1 }
 0xadf   : > { %1683 = vst.msk [vmem:[%s3306_s0 + $0x10] sm:$0xff] %vm769_vm2, %v1679_v53  ;;  %v1687_v55 = vpack.c.bf16 %v1679_v53, %v1679_v53  ;;  %2612 = vmatprep.subr.bf16.mxu1 %v2869_v1 }
 0xae0   : > { %v2748_v56 = vpop.eup %2747 }
 0xae1   : > { %v1680_v57 = vmul.f32 %v2748_v56, %v2740_v37  ;;  %2595 = vmatmul.mubr.msk.bf16.vlgmr.msra.gmra.mrb[32].mxu0 %vm769_vm2, %v1687_v55 }
 0xae2   : > { %2608 = vmatprep.mubr.msk.bf16.mxu0 %vm2870_vm0, %v2869_v1  ;;  %2605 = vmatpush3.bf16.msra.mxu0 %v2707_v63 }
 0xae3   : > { %1684 = vst.msk [vmem:[%s3306_s0 + $0x18] sm:$0xff] %vm769_vm2, %v1680_v57  ;;  %v1688_v58 = vpack.c.bf16 %v1680_v57, %v1680_v57  ;;  %2606 = vmatprep.subr.bf16.mxu0 %v2869_v1 }
 0xae5   : > { %2601 = vmatmul.mubr.msk.bf16.vlgmr.msra.gmra.mrb[40].mxu1 %vm769_vm2, %v1688_v58 }
 0xae6   : > { %2616 = vmatprep.mubr.msk.bf16.mxu1 %vm2870_vm0, %v2869_v1  ;;  %2607 = vmatpush3.bf16.msra.mxu0 %v2708_v0 }
 0xae7   : > { %2620 = vmatprep.subr.bf16.mxu0 %v2869_v1  ;;  %2613 = vmatpush3.bf16.msra.mxu1 %v2709_v33 }
 0xae8   : > { %2614 = vmatprep.subr.bf16.mxu1 %v2869_v1 }
 0xb4b   : > { %v1731_v59 = vpop.f32.mrb[28].mxu0 }
 0xb4c   : > { %v2584_v60 = vpop.f32.mrb[29].mxu0 }
 0xb4d   : > { %v1734_v61 = vpop.f32.mrb[30].mxu0 }
 0xb4e   : > { %v2585_v62 = vpop.f32.mrb[31].mxu0 }
 0xbb0   : > { %v1779_v2 = vpop.f32.mrb[36].mxu1 }
 0xbb1   : > { %1882 = vrot.lane.b32.xlu1 %v1779_v2, %s3574_s22  ;;  %v2590_v28 = vpop.f32.mrb[37].mxu1 }
 0xbb2   : > { %v1782_v4 = vpop.f32.mrb[38].mxu1 }
 0xbb3   : > { %v2591_v29 = vpop.f32.mrb[39].mxu1 }
 0xbb4   : > { %v1827_v5 = vpop.f32.mrb[32].mxu0 }
 0xbb5   : > { %1886 = vrot.lane.b32.xlu0 %v1827_v5, %s3575_s3  ;;  %v2596_v6 = vpop.f32.mrb[33].mxu0 }
 0xbb6   : > { %v1830_v7 = vpop.f32.mrb[34].mxu0 }
 0xbb7   : > { %v2597_v8 = vpop.f32.mrb[35].mxu0 }
 0xbb8   : > { %v1875_v9 = vpop.f32.mrb[40].mxu1 }
 0xbb9   : > { %1890 = vrot.lane.b32.xlu1 %v1875_v9, %s3576_s29  ;;  %v2602_v10 = vpop.f32.mrb[41].mxu1 }
 0xbba   : > { %v1878_v13 = vpop.f32.mrb[42].mxu1 }
 0xbbb   : > { %v2603_v14 = vpop.f32.mrb[43].mxu1 }
 0xc23   : > { %v1883_v16 = vpop.permute.xlu1 %1882 }
 0xc24   : > { %v1893_v17 = vsel %vm769_vm2, %v1731_v59, %v1883_v16 }
 0xc27   : > { %v1887_v3 = vpop.permute.xlu0 %1886 }
 0xc28   : > { %v1894_v18 = vsel %vm1218_vm5, %v1893_v17, %v1887_v3 }
 0xc2b   : > { %v1891_v19 = vpop.permute.xlu1 %1890 }
 0xc2c   : > { %v1895_v20 = vsel %vm1220_vm6, %v1894_v18, %v1891_v19 }
 0xc2d   : > { %v1896_v15 = vpack.c.bf16 %v1895_v20, %v1895_v20 }
 0xc2f   : > { %2609 = vmatmul.mubr.msk.bf16.vlgmr.msra.gmra.mrb[36].mxu0 %vm700_vm1, %v1896_v15 }
 0xc30   : > { %2628 = vmatprep.mubr.msk.bf16.mxu0 %vm2870_vm0, %v2869_v1  ;;  %2621 = vmatpush3.bf16.msra.mxu0 %v2711_v34 }
 0xc31   : > { %2622 = vmatprep.subr.bf16.mxu0 %v2869_v1 }
 0xc34   : > { %2623 = vmatpush3.bf16.msra.mxu0 %v2712_v35 }
 0xc35   : > { %2624 = vmatprep.subr.bf16.mxu0 %v2869_v1 }
 0xc38   : > { %2625 = vmatpush3.bf16.msra.mxu0 %v2713_v46 }
 0xc39   : > { %2626 = vmatprep.subr.bf16.mxu0 %v2869_v1  ;;  %v2403_v1 = vld [vmem:[%s3512_s15] ss:$0 sm:$0xff] }
 0xc3c   : > { %2627 = vmatpush3.bf16.msra.mxu0 %v2714_v47 }
 0xd02   : > { %v1950_v11 = vpop.f32.mrb[36].mxu0 }
 0xd03   : > { %v1958_v12 = vadd.f32 %v1950_v11, %v3233_v26  ;;  %v2610_v21 = vpop.f32.mrb[37].mxu0  ;;  %v2710_v26 = vld [vmem:[%s3509_s12 + $0x8] sm:$0xff]  }
 0xd04   : > { %v1953_v22 = vpop.f32.mrb[38].mxu0  ;;  %2615 = vmatpush3.bf16.msra.mxu1 %v2710_v26 }
 0xd05   : > { %v2611_v23 = vpop.f32.mrb[39].mxu0  ;;  %v1959_v24 = vsel %vm700_vm1, %v1958_v12, 0.0 }
 0xd06   : > { %1960 = vadd.xlane.f32.xlu0 %v1959_v24 }
 0xd93   : > { %v1961_v25 = vpop.xlane.xlu0 %1960 }
 0xd94   : > { %v1962_v27 = vmul.f32 0.03125, %v1961_v25 }
 0xd96   : > { %v1963_v30 = vsub.f32 %v1958_v12, %v1962_v27 }
 0xd98   : > { %v1964_v31 = vmul.f32 %v1963_v30, %v1963_v30 }
 0xd9a   : > { %v1965_v32 = vsel %vm700_vm1, %v1964_v31, 0.0 }
 0xd9b   : > { %1966 = vadd.xlane.f32.xlu1 %v1965_v32 }
 0xe28   : > { %v1967_v36 = vpop.xlane.xlu1 %1966 }
 0xe29   : > { %v1968_v37 = vmul.f32 0.03125, %v1967_v36 }
 0xe2b   : > { %v1969_v38 = vadd.f32 1e-05, %v1968_v37 }
 0xe2d   : > { %2749 = vrsqrt.f32 %v1969_v38 }
 0xe37   : > { %v2750_v39 = vpop.eup %2749 }
 0xe38   : > { %v1971_v42 = vmul.f32 %v2750_v39, %v1963_v30 }
 0xe3a   : > { %v1978_v41 = vmul.f32 %v2397_v40, %v1971_v42 }
 0xe3c   : > { %v1985_v44 = vadd.f32 %v2398_v43, %v1978_v41 }
 0xe3e   : > { %v1986_v45 = vpack.c.bf16 %v1985_v44, %v1985_v44 }
 0xe40   : > { %2617 = vmatmul.mubr.msk.bf16.vlgmr.msra.gmra.mrb[44].mxu1 %vm700_vm1, %v1986_v45 }
 0xf13   : > { %v2047_v49 = vpop.f32.mrb[44].mxu1 }
 0xf14   : > { %v2048_v50 = vadd.f32 %v2399_v48, %v2047_v49  ;;  %v2618_v51 = vpop.f32.mrb[45].mxu1 }
 0xf15   : > { %v2050_v52 = vpop.f32.mrb[46].mxu1 }
 0xf16   : > { %v2053_v53 = vmax.f32 %v2048_v50, 0.0  ;;  %v2619_v54 = vpop.f32.mrb[47].mxu1 }
 0xf18   : > { %v2054_v55 = vpack.c.bf16 %v2053_v53, %v2053_v53 }
 0xf1a   : > { %2629 = vmatmul.mubr.msk.bf16.vlgmr.msra.gmra.mrb[40].mxu0 %vm2094_vm8, %v2054_v55 }
 0xfed   : > { %v2132_v56 = vpop.f32.mrb[40].mxu0 }
 0xfee   : > { %v2133_v57 = vadd.f32 %v2403_v1, %v2132_v56  ;;  %v2630_v58 = vpop.f32.mrb[41].mxu0 }
 0xfef   : > { %v2135_v59 = vpop.f32.mrb[42].mxu0 }
 0xff0   : > { %v2631_v60 = vpop.f32.mrb[43].mxu0  ;;  %v2140_v61 = vadd.f32 %v2133_v57, %v1985_v44 }
 0xff2   : > { %v2141_v62 = vsel %vm700_vm1, %v2140_v61, 0.0 }
 0xff3   : > { %2142 = vadd.xlane.f32.xlu0 %v2141_v62 }
0x1080   : > { %v2143_v63 = vpop.xlane.xlu0 %2142 }
0x1081   : > { %v2144_v0 = vmul.f32 0.03125, %v2143_v63 }
0x1083   : > { %v3388_v2 = vsub.f32 %v2140_v61, %v2144_v0 }
0x1085   : > { %v2146_v28 = vmul.f32 %v3388_v2, %v3388_v2 }
0x1087   : > { %v2147_v4 = vsel %vm700_vm1, %v2146_v28, 0.0 }
0x1088   : > { %2148 = vadd.xlane.f32.xlu0 %v2147_v4 }
0x1089   : > { %2781 = shalt.err (!%p2778_p2)
}
0x108a   : > { %s2782_s3 = scalar_lea.hbm %s3400_s25, 512  ;;  %s2786_s26 = scalar_lea.hbm %s3516_s19, 1024 }
0x108b   : > { %p2783_p3 = scmp.ne.s32.totalorder %s3400_s25, %s2782_s3  ;;  %p2787_p8 = scmp.lt.u32.totalorder %s3400_s25, %s3516_s19 }
0x108c   : > { %p2788_p9 = scmp.lt.u32.totalorder %s2786_s26, %s2782_s3  ;;  %p2790_p11 = scmp.lt.u32.totalorder %s2782_s3, %s3400_s25 }
0x108d   : > { %p2784_p4 = pnand %p2783_p3, %p3026_p5 }
0x108e   : > { %p2789_p10 = por %p2788_p9, %p2787_p8 }
0x108f   : > { %p2785_p7 = pneg %p2784_p4 }
0x1090   : > { %p2791_p12 = por %p2790_p11, %p2789_p10 }
0x1092   : > { %p2792_p13 = pnand %p2791_p12, %p2785_p7 }
0x1094   : > { %2795 = shalt.err (!%p2792_p13)
}
0x1095   : > { %s2881_s21 = smov 128   ;;  %s3577_s30 = scalar_lea.sflag [#allocation3], %s3151_s28 }
0x1096   : > { %2636 = dma.vmem_to_hbm [thread:$0]  (%p3026_p5), %s3402_s6, 512, %s3400_s25, %s3577_s30, %s2881_s21, %s2881_s21, %s3574_s22  }
0x1097   : > { %s3578_s5 = sshll.u32 %s3009_s2, 9  ;;  %s2211_s26 = sshll.u32 %s3306_s0, 4  ;;  %s3439_s26 = int_to_ptr.vmem [resolvable:$true] %s2211_s26 }
0x1098   : > { %s3436_s29 = scalar_lea.hbm %s3517_s20, %s3578_s5  ;;  %s2179_s7 = scalar_lea.sflag [#allocation7], %s3151_s28 }
0x1099   : > { %s2796_s8 = scalar_lea.vmem %s3439_s26, 512  ;;  %s2882_s9 = smov [#allocation6]  }
0x109a   : > { %p2797_p0 = scmp.ne.s32.totalorder %s3439_s26, %s2796_s8  ;;  %s2800_s6 = sshll.u32 %s2882_s9, 4  ;;  %s2801_s6 = int_to_ptr.vmem [resolvable:$false] %s2800_s6 }
0x109b   : > { %s2802_s2 = scalar_lea.vmem %s2801_s6, 1024  ;;  %p2803_p3 = scmp.lt.s32.totalorder %s3439_s26, %s2801_s6 }
0x109c   : > { %p2798_p1 = pnand %p2797_p0, %p3026_p5  ;;  %p2804_p4 = scmp.lt.s32.totalorder %s2802_s2, %s2796_s8 }
0x109e   : > { %p2799_p2 = pneg %p2798_p1  ;;  %p2805_p7 = por %p2804_p4, %p2803_p3 }
0x10a0   : > { %p2806_p8 = pnand %p2805_p7, %p2799_p2 }
0x10a2   : > { %2809 = shalt.err (!%p2806_p8)
}
0x10a3   : > { %s2810_s0 = scalar_lea.hbm %s3436_s29, 512  ;;  %s2814_s9 = scalar_lea.hbm %s3517_s20, 1024 }
0x10a4   : > { %p2811_p9 = scmp.ne.s32.totalorder %s3436_s29, %s2810_s0  ;;  %p2815_p12 = scmp.lt.u32.totalorder %s3436_s29, %s3517_s20 }
0x10a5   : > { %p2816_p13 = scmp.lt.u32.totalorder %s2814_s9, %s2810_s0  ;;  %p2818_p1 = scmp.lt.u32.totalorder %s2810_s0, %s3436_s29 }
0x10a6   : > { %p2812_p10 = pnand %p2811_p9, %p3026_p5 }
0x10a7   : > { %p2817_p0 = por %p2816_p13, %p2815_p12 }
0x10a8   : > { %p2813_p11 = pneg %p2812_p10 }
0x10a9   : > { %p2819_p2 = por %p2818_p1, %p2817_p0 }
0x10ab   : > { %p2820_p3 = pnand %p2819_p2, %p2813_p11 }
0x10ad   : > { %2823 = shalt.err (!%p2820_p3)
}
0x10ae   : > { %2637 = dma.vmem_to_hbm [thread:$0]  (%p3026_p5), %s3439_s26, 512, %s3436_s29, %s2179_s7, %s2881_s21, %s2881_s21, %s3574_s22  }
0x10af   : > { %v2409_v8 = vld [vmem:[%s3513_s16] ss:$0 sm:$0xff]  ;;  %s676_s22 = scalar_lea.vmem %s3515_s18, %s3069_s27 }
0x10b0   : > { %v2410_v10 = vld [vmem:[%s3514_s17] ss:$0 sm:$0xff] }
0x1115   : > { %v2149_v29 = vpop.xlane.xlu0 %2148 }
0x1116   : > { %v2150_v5 = vmul.f32 0.03125, %v2149_v29 }
0x1118   : > { %v2151_v6 = vadd.f32 1e-05, %v2150_v5 }
0x111a   : > { %2751 = vrsqrt.f32 %v2151_v6 }
0x1124   : > { %v2752_v7 = vpop.eup %2751 }
0x1125   : > { %v2153_v9 = vmul.f32 %v2752_v7, %v3388_v2 }
0x1127   : > { %v2160_v13 = vmul.f32 %v2409_v8, %v2153_v9 }
0x1129   : > { %v2167_v14 = vadd.f32 %v2410_v10, %v2160_v13 }
0x112b   : > { %2168 = vst.msk [vmem:[%s676_s22] sm:$0xff] %vm700_vm1, %v2167_v14 }
0x112c PF: > { %p2653_p5 = scmp.ge.s32.totalorder %s2866_s24, 2  ;;  %s2233_s29 = sand.u32 1, %s2854_s1  }
0x112d   : > { %s2234_s26 = scalar_lea.sflag [#allocation3], %s2233_s29 }
0x112e   : > { %p2645_p4 = pnand %p2653_p5, %p3030_p6 }
0x1130   : > { %2845 = dma.done.wait (!%p2645_p4), %s2234_s26, 512  }
0x1131   : > { %2847 = vsyncadd (!%p2645_p4), %s2234_s26, 4294966784  ;;  %s2243_s7 = scalar_lea.sflag [#allocation7], %s2233_s29 }
0x1132   : > { %2849 = dma.done.wait (!%p2645_p4), %s2243_s7, 512  }
0x1133   : > { %2851 = vsyncadd (!%p2645_p4), %s2243_s7, 4294966784  ;;  %s3580_s24 = sld [smem:[#allocation13_spill]]  ;;  %s3581_s1 = sld [smem:[#allocation11_spill]] }
0x1134   : > { %s3582_s22 = sld [smem:[#allocation12_spill]]  ;;  %s3583_s23 = sld [smem:[#allocation14_spill]] }
0x1139   : > { %p35_p7 = scmp.ge.s32.totalorder %s3580_s24, 4  }
0x113b   :  { %37 = sbr.rel (!%p35_p7) target bundleno = 17 (0x11), region = 164 }
0x1142   :  { %2248 = vsyncpa [#allocation3], 1 }
0x1143   :  { %2250 = vsyncpa [#allocation3 + $0x1], 1 }
0x1144   :  { %2251 = vsyncpa [#allocation7], 1 }
0x1145   :  { %2253 = vsyncpa [#allocation7 + $0x1], 1 }
0x1146   :  { %2254 = vsyncpa [#allocation4], 1 }
0x1147   :  { %2256 = vsyncpa [#allocation4 + $0x1], 1 }

</bundles_post_ra>
